<compile_context>
chip_gen: v7x
topology: tpu7x:2x2x1
jax: 0.10.0
libtpu: 0.0.40
codegen_flags: <defaults>
</compile_context>

<pallas_src>
import functools
import numpy as np
import jax
import jax.numpy as jnp
from jax.experimental import pallas as pl
from jax.experimental.pallas import tpu as pltpu


# ----------------------------------------------------------------------------
# Host-side structural arrays (built once, VMEM-resident across the grid).
# ----------------------------------------------------------------------------
def _shift_masks(n, period):
    """[2, 1, n] 0/1 masks: [not-first-in-sample, not-last-in-sample] lanes."""
    t = np.arange(n)
    not_first = (t % period != 0).astype(np.float32)
    not_last = (t % period != period - 1).astype(np.float32)
    return np.stack([not_first, not_last]).reshape(2, 1, n)


def _shift_mats(n, period):
    """[2, n, n]: X @ S shifts X by -1/+1 along lanes with zeros at per-sample
    boundaries (fallback path for widths where roll is not used)."""
    j = np.arange(n)[:, None]
    t = np.arange(n)[None, :]
    prev = ((j == t - 1) & (t % period != 0)).astype(np.float32)          # X[:, t-1]
    nxt = ((j == t + 1) & (t % period != period - 1)).astype(np.float32)  # X[:, t+1]
    return np.stack([prev, nxt])


def _pool_even(n):
    """[n, n//2]: X @ P selects even lanes (stride-2 gather)."""
    j = np.arange(n)[:, None]
    m = np.arange(n // 2)[None, :]
    return (j == 2 * m).astype(np.float32)


def _pool_mats(n):
    """[2, n, n//2]: even / odd stride-2 gathers (fallback path)."""
    j = np.arange(n)[:, None]
    m = np.arange(n // 2)[None, :]
    return np.stack([(j == 2 * m).astype(np.float32),
                     (j == 2 * m + 1).astype(np.float32)])


def _up_mats(n):
    """[2, n, 2n]: X @ U[parity] scatters lane m to output lane 2m + parity."""
    m = np.arange(n)[:, None]
    t = np.arange(2 * n)[None, :]
    return np.stack([(t == 2 * m).astype(np.float32),
                     (t == 2 * m + 1).astype(np.float32)])


# ----------------------------------------------------------------------------
# One-time probe: pltpu.roll availability + shift-sign convention.
# ----------------------------------------------------------------------------
def _roll_probe_kernel(x_ref, o_ref):
    o_ref[...] = pltpu.roll(x_ref[...], 1, axis=1)


@functools.lru_cache(maxsize=None)
def _roll_sign():
    """+1 if pltpu.roll matches jnp.roll's convention, -1 if opposite,
    None if roll is unusable (then the matmul-shift fallback is used)."""
    try:
        base = np.arange(8 * 128, dtype=np.float32).reshape(8, 128)
        got = pl.pallas_call(
            _roll_probe_kernel,
            out_shape=jax.ShapeDtypeStruct((8, 128), jnp.float32),
        )(jnp.asarray(base))
        got = np.asarray(jax.block_until_ready(got))
        if np.array_equal(got, np.roll(base, 1, axis=1)):
            return 1
        if np.array_equal(got, np.roll(base, -1, axis=1)):
            return -1
    except Exception:
        pass
    return None


# ----------------------------------------------------------------------------
# Kernel builder (closed over the static per-layer configuration).
# ----------------------------------------------------------------------------
def _build_kernel(H, roll_ok, roll_sign, conv_stacked, convT_stacked):
    r1, r2, r3, r4 = roll_ok

    def kernel(x_ref,
               w1, b1, w2, b2, w3, b3, dd1, e1, dd2, e2, dd3, e3,
               sh1, sh2, sh3, sh4, p1, p2, p3, u1, u2, u3,
               out_ref):

        def mm(a, b):
            return jnp.dot(a, b, preferred_element_type=jnp.float32)

        def roll_lanes(z, jnp_shift):
            # pltpu.roll with the sign convention fixed to match jnp.roll, and the
            # shift normalized to be non-negative (modular rotation).
            n = z.shape[-1]
            return pltpu.roll(z, (roll_sign * jnp_shift) % n, axis=1)

        def shift_prev(z, sh, rok):
            # column l of result = z[:, l-1], zero at per-sample starts
            if rok:
                return roll_lanes(z, 1) * sh[0]
            return mm(z, sh[0])

        def shift_next(z, sh, rok):
            # column l of result = z[:, l+1], zero at per-sample ends
            if rok:
                return roll_lanes(z, -1) * sh[1]
            return mm(z, sh[1])

        def conv1d(x, w, b, sh, cout, cin, rok, stacked):
            # Conv1d(k=3, pad=1): out[l] = W0 x[l-1] + W1 x[l] + W2 x[l+1] + b
            if stacked:                        # one [3*Cout, Cin] channel matmul
                ya = (w[...] * x) if cin == 1 else mm(w[...], x)   # Cin=1 -> VPU
                y0, y1, y2 = (ya[k * cout:(k + 1) * cout] for k in range(3))
            else:                              # per-tap fallback (Cout % 8 != 0)
                y0, y1, y2 = (((w[k] * x) if cin == 1 else mm(w[k], x))
                              for k in range(3))
            return y1 + shift_prev(y0, sh, rok) + shift_next(y2, sh, rok) + b[...]

        def maxpool2(x, p, rok):
            # MaxPool1d(2, stride=2)
            if rok:                            # pairwise max, single even-lane select
                z = jnp.maximum(x, roll_lanes(x, -1))
                return mm(z, p[...])
            return jnp.maximum(mm(x, p[0]), mm(x, p[1]))

        def conv_transpose1d(x, d, b, sh, u, cout, rok, stacked):
            # ConvTranspose1d(k=4, s=2, p=1):
            #   out[:, 2m]   = W1 x[m] + W3 x[m-1]
            #   out[:, 2m+1] = W2 x[m] + W0 x[m+1]
            if stacked:                        # one [4*Cout, Cin] channel matmul
                ya = mm(d[...], x)
                y0, y1, y2, y3 = (ya[k * cout:(k + 1) * cout] for k in range(4))
            else:
                y0, y1, y2, y3 = (mm(d[k], x) for k in range(4))
            even = y1 + shift_prev(y3, sh, rok)
            odd = y2 + shift_next(y0, sh, rok)
            return mm(even, u[0]) + mm(odd, u[1]) + b[...]

        relu = lambda v: jnp.maximum(v, 0.0)

        h = x_ref[0]                                                        # [1, n1]
        h = relu(conv1d(h, w1, b1, sh1, H, 1, r1, conv_stacked[0]))         # [H, n1]
        h = maxpool2(h, p1, r1)                                             # [H, n2]
        h = relu(conv1d(h, w2, b2, sh2, H // 2, H, r2, conv_stacked[1]))    # [H/2, n2]
        h = maxpool2(h, p2, r2)                                             # [H/2, n3]
        h = relu(conv1d(h, w3, b3, sh3, H // 4, H // 2, r3, conv_stacked[2]))
        h = maxpool2(h, p3, r3)                                             # [H/4, n4]
        h = relu(conv_transpose1d(h, dd1, e1, sh4, u1, H // 2, r4, convT_stacked[0]))
        h = relu(conv_transpose1d(h, dd2, e2, sh3, u2, H, r3, convT_stacked[1]))
        h = conv_transpose1d(h, dd3, e3, sh2, u3, 1, r2, convT_stacked[2])  # [1, n1]
        out_ref[0] = h

    return kernel


# ----------------------------------------------------------------------------
# Wrapper
# ----------------------------------------------------------------------------
def _pick_b_tile(B, L, max_lanes):
    divs = [d for d in range(1, B + 1) if B % d == 0 and d * L <= max_lanes]
    if not divs:
        # The old b_tile=1 fallback silently blew the VMEM cap; fail loudly instead.
        raise ValueError(f"seq_len={L} exceeds max_lanes={max_lanes}; "
                         "L-tiling with a halo is not implemented.")
    # Prefer lane-dense tiles (n1 % 128 == 0), then >=2 grid steps (two TensorCores
    # on v7x), then the largest tile (fewest grid steps).
    return max(divs, key=lambda d: ((d * L) % 128 == 0, B // d >= 2, d))


def conv_autoencoder_forward(x, params, *, b_tile=None, max_lanes=1024):
    """x: [B, L, 1] float32 -> [B, L, 1] float32 (matches ConvAutoencoder.forward)."""
    B, L, cin = x.shape
    assert cin == 1, "ConvAutoencoder expects a single input channel"
    assert L % 8 == 0, "seq_len must be divisible by 8 (3x MaxPool1d(2))"

    (w1, b1, w2, b2, w3, b3, d1, e1, d2, e2, d3, e3) = params
    H = int(w1.shape[0])

    if b_tile is None:
        b_tile = _pick_b_tile(B, L, max_lanes)
    assert B % b_tile == 0
    G = B // b_tile
    n1 = b_tile * L
    n2, n3, n4 = n1 // 2, n1 // 4, n1 // 8

    roll_sign = _roll_sign()
    widths = (n1, n2, n3, n4)
    periods = (L, L // 2, L // 4, L // 8)
    # Use roll + mask only where the folded width is 128-lane aligned; tiny or
    # unaligned widths keep the (cheap at that size) matmul-shift fallback.
    roll_ok = tuple(roll_sign is not None and w % 128 == 0 for w in widths)

    # --- weights: stack taps into one channel matmul per layer where possible ---
    f32 = jnp.float32
    col = lambda b: jnp.asarray(b, f32).reshape(-1, 1)

    def conv_w(w, stacked):       # Conv1d weight [Cout, Cin, 3]
        t = jnp.transpose(jnp.asarray(w, f32), (2, 0, 1))       # [3, Cout, Cin]
        return t.reshape(3 * t.shape[1], t.shape[2]) if stacked else t

    def convT_w(d, stacked):      # ConvTranspose1d weight [Cin, Cout, 4]
        t = jnp.transpose(jnp.asarray(d, f32), (2, 1, 0))       # [4, Cout, Cin]
        return t.reshape(4 * t.shape[1], t.shape[2]) if stacked else t

    conv_stacked = (H % 8 == 0, (H // 2) % 8 == 0, (H // 4) % 8 == 0)
    convT_stacked = ((H // 2) % 8 == 0, H % 8 == 0, False)      # last ConvT: Cout=1

    weight_args = (
        conv_w(w1, conv_stacked[0]), col(b1),
        conv_w(w2, conv_stacked[1]), col(b2),
        conv_w(w3, conv_stacked[2]), col(b3),
        convT_w(d1, convT_stacked[0]), col(e1),
        convT_w(d2, convT_stacked[1]), col(e2),
        convT_w(d3, convT_stacked[2]), col(e3),
    )

    # --- structural arrays (per stage width) ---
    shift_args = tuple(
        jnp.asarray(_shift_masks(w, p) if r else _shift_mats(w, p))
        for w, p, r in zip(widths, periods, roll_ok))
    pool_args = tuple(
        jnp.asarray(_pool_even(w) if r else _pool_mats(w))
        for w, r in zip(widths[:3], roll_ok[:3]))
    up_args = tuple(jnp.asarray(_up_mats(w)) for w in (n4, n3, n2))

    # Fold b_tile samples into the lane axis: [G, 1, b_tile*L].
    x_lane = jnp.asarray(x, f32)[:, :, 0].reshape(G, 1, n1)
    args = (x_lane, *weight_args, *shift_args, *pool_args, *up_args)

    def resident(a):
        # Full-array block with constant block index: DMA'd once, VMEM-resident.
        nd = a.ndim
        return pl.BlockSpec(a.shape, lambda g, _nd=nd: (0,) * _nd)

    in_specs = [pl.BlockSpec((1, 1, n1), lambda g: (g, 0, 0))]
    in_specs += [resident(a) for a in args[1:]]
    out_specs = pl.BlockSpec((1, 1, n1), lambda g: (g, 0, 0))

    # Resident inputs are double-buffered by the default pipeline; size the scoped
    # VMEM limit accordingly (v5e's default scoped limit is only 16 MiB).
    resident_bytes = sum(int(a.size) * 4 for a in args[1:])
    vmem_limit = int(min(100 * 2**20, max(32 * 2**20, 2 * resident_bytes + 8 * 2**20)))

    kernel = _build_kernel(H, roll_ok, 1 if roll_sign is None else roll_sign,
                           conv_stacked, convT_stacked)

    y = pl.pallas_call(
        kernel,
        out_shape=jax.ShapeDtypeStruct((G, 1, n1), jnp.float32),
        grid_spec=pltpu.PrefetchScalarGridSpec(
            num_scalar_prefetch=0,
            grid=(G,),
            in_specs=in_specs,
            out_specs=out_specs,
        ),
        compiler_params=pltpu.CompilerParams(
            dimension_semantics=("parallel",),       # batch tiles are independent
            vmem_limit_bytes=vmem_limit,
        ),
    )(*args)
    return y.reshape(B, L, 1)


# ----------------------------------------------------------------------------
# Parameter init + pure-JAX (XLA) reference
# ----------------------------------------------------------------------------
def init_params(key, hidden_size):
    H = hidden_size
    shapes = [
        ("w1", (H, 1, 3)), ("b1", (H,)),                 # Conv1d(1, H, 3, pad=1)
        ("w2", (H // 2, H, 3)), ("b2", (H // 2,)),       # Conv1d(H, H/2, 3, pad=1)
        ("w3", (H // 4, H // 2, 3)), ("b3", (H // 4,)),  # Conv1d(H/2, H/4, 3, pad=1)
        ("d1", (H // 4, H // 2, 4)), ("e1", (H // 2,)),  # ConvT(H/4, H/2, 4, s=2, p=1)
        ("d2", (H // 2, H, 4)), ("e2", (H,)),            # ConvT(H/2, H, 4, s=2, p=1)
        ("d3", (H, 1, 4)), ("e3", (1,)),                 # ConvT(H, 1, 4, s=2, p=1)
    ]
    keys = jax.random.split(key, len(shapes))
    params = []
    for k, (_, shp) in zip(keys, shapes):
        fan_in = shp[1] * shp[-1] if len(shp) == 3 else shp[0]
        scale = 1.0 / np.sqrt(max(fan_in, 1))
        params.append(scale * jax.random.normal(k, shp, dtype=jnp.float32))
    return tuple(params)


def reference_forward(x, params):
    """Pure-JAX (XLA) reference matching PyTorch ConvAutoencoder.forward."""
    (w1, b1, w2, b2, w3, b3, d1, e1, d2, e2, d3, e3) = params
    h = jnp.transpose(x, (0, 2, 1))  # [B, 1, L]

    def conv(x, w, b):
        y = jax.lax.conv_general_dilated(
            x, w, window_strides=(1,), padding=[(1, 1)],
            dimension_numbers=("NCH", "OIH", "NCH"))
        return y + b[None, :, None]

    def pool(x):
        return jax.lax.reduce_window(x, -jnp.inf, jax.lax.max,
                                     (1, 1, 2), (1, 1, 2), "VALID")

    def convT(x, w, b):
        wt = jnp.flip(jnp.transpose(w, (1, 0, 2)), axis=2)  # [Cout, Cin, K], flipped
        y = jax.lax.conv_general_dilated(
            x, wt, window_strides=(1,), padding=[(2, 2)],
            lhs_dilation=(2,), dimension_numbers=("NCH", "OIH", "NCH"))
        return y + b[None, :, None]

    h = pool(jax.nn.relu(conv(h, w1, b1)))
    h = pool(jax.nn.relu(conv(h, w2, b2)))
    h = pool(jax.nn.relu(conv(h, w3, b3)))
    h = jax.nn.relu(convT(h, d1, e1))
    h = jax.nn.relu(convT(h, d2, e2))
    h = convT(h, d3, e3)
    return jnp.transpose(h, (0, 2, 1))  # [B, L, 1]


if __name__ == "__main__":
    key = jax.random.PRNGKey(0)
    k1, k2, k3 = jax.random.split(key, 3)

    hidden_size = 32
    params = init_params(k3, hidden_size)

    # Config A: tiny folded widths (32..4) -> exercises the matmul-shift fallback.
    xa = jax.random.normal(k1, (4, 16, 1), dtype=jnp.float32)
    # Config B: lane-dense folded widths (512/256/128) -> exercises roll + mask path,
    # lane-dense stores, and G=2 grid steps.
    xb = jax.random.normal(k2, (8, 128, 1), dtype=jnp.float32)

    for x in (xa, xb):
        out = jax.block_until_ready(conv_autoencoder_forward(x, params))
        ref = jax.block_until_ready(reference_forward(x, params))
        assert out.shape == x.shape, (out.shape, x.shape)
        np.testing.assert_allclose(np.asarray(out), np.asarray(ref),
                                   rtol=1e-4, atol=1e-4)

    print("KERNEL_OK")
</pallas_src>

<mosaic_0001>
module attributes {stable_mosaic.version = 11 : i64} {
  func.func @_roll_probe_kernel(%arg0: memref<8x128xf32, #tpu.memory_space<vmem>>, %arg1: memref<8x128xf32, #tpu.memory_space<vmem>>) attributes {dimension_semantics = [], scalar_prefetch = 0 : i64, scratch_operands = 0 : i64, tpu.core_type = #tpu.core_type<tc>} {
    %c0 = arith.constant 0 : index
    %c0_0 = arith.constant 0 : index
    %0 = vector.load %arg0[%c0, %c0_0] : memref<8x128xf32, #tpu.memory_space<vmem>>, vector<8x128xf32>
    %c1_i32 = arith.constant 1 : i32
    %1 = tpu.dynamic_rotate %0 by %c1_i32 dim 1 : vector<8x128xf32>, i32 -> vector<8x128xf32>
    %c0_1 = arith.constant 0 : index
    %c0_2 = arith.constant 0 : index
    %2 = vector.load %arg1[%c0_1, %c0_2] : memref<8x128xf32, #tpu.memory_space<vmem>>, vector<8x128xf32>
    tpu.vector_store %arg1[%c0_1, %c0_2], %1 {strides = array<i32>} : memref<8x128xf32, #tpu.memory_space<vmem>>, vector<8x128xf32>,
    return
  }
}

module attributes {stable_mosaic.version = 11 : i64} {
  func.func @kernel(%arg0: i32, %arg1: memref<1x1x32xf32, #tpu.memory_space<vmem>>, %arg2: memref<96x1xf32, #tpu.memory_space<vmem>>, %arg3: memref<32x1xf32, #tpu.memory_space<vmem>>, %arg4: memref<48x32xf32, #tpu.memory_space<vmem>>, %arg5: memref<16x1xf32, #tpu.memory_space<vmem>>, %arg6: memref<24x16xf32, #tpu.memory_space<vmem>>, %arg7: memref<8x1xf32, #tpu.memory_space<vmem>>, %arg8: memref<64x8xf32, #tpu.memory_space<vmem>>, %arg9: memref<16x1xf32, #tpu.memory_space<vmem>>, %arg10: memref<128x16xf32, #tpu.memory_space<vmem>>, %arg11: memref<32x1xf32, #tpu.memory_space<vmem>>, %arg12: memref<4x1x32xf32, #tpu.memory_space<vmem>>, %arg13: memref<1x1xf32, #tpu.memory_space<vmem>>, %arg14: memref<2x32x32xf32, #tpu.memory_space<vmem>>, %arg15: memref<2x16x16xf32, #tpu.memory_space<vmem>>, %arg16: memref<2x8x8xf32, #tpu.memory_space<vmem>>, %arg17: memref<2x4x4xf32, #tpu.memory_space<vmem>>, %arg18: memref<2x32x16xf32, #tpu.memory_space<vmem>>, %arg19: memref<2x16x8xf32, #tpu.memory_space<vmem>>, %arg20: memref<2x8x4xf32, #tpu.memory_space<vmem>>, %arg21: memref<2x4x8xf32, #tpu.memory_space<vmem>>, %arg22: memref<2x8x16xf32, #tpu.memory_space<vmem>>, %arg23: memref<2x16x32xf32, #tpu.memory_space<vmem>>, %arg24: memref<1x1x32xf32, #tpu.memory_space<vmem>>) attributes {dimension_semantics = [#tpu.dimension_semantics<parallel>], iteration_bounds = array<i64: 2>, scalar_prefetch = 0 : i64, scratch_operands = 0 : i64, tpu.core_type = #tpu.core_type<tc>, window_params = [{transform_indices = @transform_0, window_bounds = array<i64: 1, 1, 32>}, {pipeline_mode = #tpu.pipeline_mode<synchronous>, transform_indices = @transform_1, window_bounds = array<i64: 96, 1>}, {pipeline_mode = #tpu.pipeline_mode<synchronous>, transform_indices = @transform_2, window_bounds = array<i64: 32, 1>}, {pipeline_mode = #tpu.pipeline_mode<synchronous>, transform_indices = @transform_3, window_bounds = array<i64: 48, 32>}, {pipeline_mode = #tpu.pipeline_mode<synchronous>, transform_indices = @transform_4, window_bounds = array<i64: 16, 1>}, {pipeline_mode = #tpu.pipeline_mode<synchronous>, transform_indices = @transform_5, window_bounds = array<i64: 24, 16>}, {pipeline_mode = #tpu.pipeline_mode<synchronous>, transform_indices = @transform_6, window_bounds = array<i64: 8, 1>}, {pipeline_mode = #tpu.pipeline_mode<synchronous>, transform_indices = @transform_7, window_bounds = array<i64: 64, 8>}, {pipeline_mode = #tpu.pipeline_mode<synchronous>, transform_indices = @transform_8, window_bounds = array<i64: 16, 1>}, {pipeline_mode = #tpu.pipeline_mode<synchronous>, transform_indices = @transform_9, window_bounds = array<i64: 128, 16>}, {pipeline_mode = #tpu.pipeline_mode<synchronous>, transform_indices = @transform_10, window_bounds = array<i64: 32, 1>}, {pipeline_mode = #tpu.pipeline_mode<synchronous>, transform_indices = @transform_11, window_bounds = array<i64: 4, 1, 32>}, {pipeline_mode = #tpu.pipeline_mode<synchronous>, transform_indices = @transform_12, window_bounds = array<i64: 1, 1>}, {pipeline_mode = #tpu.pipeline_mode<synchronous>, transform_indices = @transform_13, window_bounds = array<i64: 2, 32, 32>}, {pipeline_mode = #tpu.pipeline_mode<synchronous>, transform_indices = @transform_14, window_bounds = array<i64: 2, 16, 16>}, {pipeline_mode = #tpu.pipeline_mode<synchronous>, transform_indices = @transform_15, window_bounds = array<i64: 2, 8, 8>}, {pipeline_mode = #tpu.pipeline_mode<synchronous>, transform_indices = @transform_16, window_bounds = array<i64: 2, 4, 4>}, {pipeline_mode = #tpu.pipeline_mode<synchronous>, transform_indices = @transform_17, window_bounds = array<i64: 2, 32, 16>}, {pipeline_mode = #tpu.pipeline_mode<synchronous>, transform_indices = @transform_18, window_bounds = array<i64: 2, 16, 8>}, {pipeline_mode = #tpu.pipeline_mode<synchronous>, transform_indices = @transform_19, window_bounds = array<i64: 2, 8, 4>}, {pipeline_mode = #tpu.pipeline_mode<synchronous>, transform_indices = @transform_20, window_bounds = array<i64: 2, 4, 8>}, {pipeline_mode = #tpu.pipeline_mode<synchronous>, transform_indices = @transform_21, window_bounds = array<i64: 2, 8, 16>}, {pipeline_mode = #tpu.pipeline_mode<synchronous>, transform_indices = @transform_22, window_bounds = array<i64: 2, 16, 32>}, {transform_indices = @transform_23, window_bounds = array<i64: 1, 1, 32>}]} {
    %c0 = arith.constant 0 : index
    %c0_0 = arith.constant 0 : index
    %c0_1 = arith.constant 0 : index
    %0 = vector.load %arg1[%c0, %c0_0, %c0_1] : memref<1x1x32xf32, #tpu.memory_space<vmem>>, vector<1x1x32xf32>
    %1 = vector.shape_cast %0 : vector<1x1x32xf32> to vector<1x32xf32>
    %c0_2 = arith.constant 0 : index
    %c0_3 = arith.constant 0 : index
    %2 = vector.load %arg2[%c0_2, %c0_3] : memref<96x1xf32, #tpu.memory_space<vmem>>, vector<96x1xf32>
    %3 = vector.broadcast %2 : vector<96x1xf32> to vector<96x32xf32>
    %4 = vector.broadcast %1 : vector<1x32xf32> to vector<96x32xf32>
    %5 = arith.mulf %3, %4 : vector<96x32xf32>
    %6 = vector.extract_strided_slice %5 {offsets = [0, 0], sizes = [32, 32], strides = [1, 1]} : vector<96x32xf32> to vector<32x32xf32>
    %7 = vector.extract_strided_slice %5 {offsets = [32, 0], sizes = [32, 32], strides = [1, 1]} : vector<96x32xf32> to vector<32x32xf32>
    %8 = vector.extract_strided_slice %5 {offsets = [64, 0], sizes = [32, 32], strides = [1, 1]} : vector<96x32xf32> to vector<32x32xf32>
    %c0_4 = arith.constant 0 : index
    %c0_5 = arith.constant 0 : index
    %c0_6 = arith.constant 0 : index
    %9 = vector.load %arg14[%c0_4, %c0_5, %c0_6] : memref<2x32x32xf32, #tpu.memory_space<vmem>>, vector<1x32x32xf32>
    %10 = vector.shape_cast %9 : vector<1x32x32xf32> to vector<32x32xf32>
    %cst = arith.constant dense<0.000000e+00> : vector<32x32xf32>
    %11 = tpu.matmul %6, %10, %cst {dimension_numbers = #tpu.dot_dimension_numbers<[1], [0], [0], [1], [0, 0, 1, 1], [], []>} : vector<32x32xf32>, vector<32x32xf32>, vector<32x32xf32> -> vector<32x32xf32>
    %12 = arith.addf %7, %11 : vector<32x32xf32>
    %c1 = arith.constant 1 : index
    %c0_7 = arith.constant 0 : index
    %c0_8 = arith.constant 0 : index
    %13 = vector.load %arg14[%c1, %c0_7, %c0_8] : memref<2x32x32xf32, #tpu.memory_space<vmem>>, vector<1x32x32xf32>
    %14 = vector.shape_cast %13 : vector<1x32x32xf32> to vector<32x32xf32>
    %cst_9 = arith.constant dense<0.000000e+00> : vector<32x32xf32>
    %15 = tpu.matmul %8, %14, %cst_9 {dimension_numbers = #tpu.dot_dimension_numbers<[1], [0], [0], [1], [0, 0, 1, 1], [], []>} : vector<32x32xf32>, vector<32x32xf32>, vector<32x32xf32> -> vector<32x32xf32>
    %16 = arith.addf %12, %15 : vector<32x32xf32>
    %c0_10 = arith.constant 0 : index
    %c0_11 = arith.constant 0 : index
    %17 = vector.load %arg3[%c0_10, %c0_11] : memref<32x1xf32, #tpu.memory_space<vmem>>, vector<32x1xf32>
    %18 = vector.broadcast %17 : vector<32x1xf32> to vector<32x32xf32>
    %19 = arith.addf %16, %18 : vector<32x32xf32>
    %cst_12 = arith.constant 0.000000e+00 : f32
    %20 = vector.broadcast %cst_12 : f32 to vector<32x32xf32>
    %21 = arith.maximumf %19, %20 : vector<32x32xf32>
    %c0_13 = arith.constant 0 : index
    %c0_14 = arith.constant 0 : index
    %c0_15 = arith.constant 0 : index
    %22 = vector.load %arg18[%c0_13, %c0_14, %c0_15] : memref<2x32x16xf32, #tpu.memory_space<vmem>>, vector<1x32x16xf32>
    %23 = vector.shape_cast %22 : vector<1x32x16xf32> to vector<32x16xf32>
    %cst_16 = arith.constant dense<0.000000e+00> : vector<32x16xf32>
    %24 = tpu.matmul %21, %23, %cst_16 {dimension_numbers = #tpu.dot_dimension_numbers<[1], [0], [0], [1], [0, 0, 1, 1], [], []>} : vector<32x32xf32>, vector<32x16xf32>, vector<32x16xf32> -> vector<32x16xf32>
    %c1_17 = arith.constant 1 : index
    %c0_18 = arith.constant 0 : index
    %c0_19 = arith.constant 0 : index
    %25 = vector.load %arg18[%c1_17, %c0_18, %c0_19] : memref<2x32x16xf32, #tpu.memory_space<vmem>>, vector<1x32x16xf32>
    %26 = vector.shape_cast %25 : vector<1x32x16xf32> to vector<32x16xf32>
    %cst_20 = arith.constant dense<0.000000e+00> : vector<32x16xf32>
    %27 = tpu.matmul %21, %26, %cst_20 {dimension_numbers = #tpu.dot_dimension_numbers<[1], [0], [0], [1], [0, 0, 1, 1], [], []>} : vector<32x32xf32>, vector<32x16xf32>, vector<32x16xf32> -> vector<32x16xf32>
    %28 = arith.maximumf %24, %27 : vector<32x16xf32>
    %c0_21 = arith.constant 0 : index
    %c0_22 = arith.constant 0 : index
    %29 = vector.load %arg4[%c0_21, %c0_22] : memref<48x32xf32, #tpu.memory_space<vmem>>, vector<48x32xf32>
    %cst_23 = arith.constant dense<0.000000e+00> : vector<48x16xf32>
    %30 = tpu.matmul %29, %28, %cst_23 {dimension_numbers = #tpu.dot_dimension_numbers<[1], [0], [0], [1], [0, 0, 1, 1], [], []>} : vector<48x32xf32>, vector<32x16xf32>, vector<48x16xf32> -> vector<48x16xf32>
    %31 = vector.extract_strided_slice %30 {offsets = [0, 0], sizes = [16, 16], strides = [1, 1]} : vector<48x16xf32> to vector<16x16xf32>
    %32 = vector.extract_strided_slice %30 {offsets = [16, 0], sizes = [16, 16], strides = [1, 1]} : vector<48x16xf32> to vector<16x16xf32>
    %33 = vector.extract_strided_slice %30 {offsets = [32, 0], sizes = [16, 16], strides = [1, 1]} : vector<48x16xf32> to vector<16x16xf32>
    %c0_24 = arith.constant 0 : index
    %c0_25 = arith.constant 0 : index
    %c0_26 = arith.constant 0 : index
    %34 = vector.load %arg15[%c0_24, %c0_25, %c0_26] : memref<2x16x16xf32, #tpu.memory_space<vmem>>, vector<1x16x16xf32>
    %35 = vector.shape_cast %34 : vector<1x16x16xf32> to vector<16x16xf32>
    %cst_27 = arith.constant dense<0.000000e+00> : vector<16x16xf32>
    %36 = tpu.matmul %31, %35, %cst_27 {dimension_numbers = #tpu.dot_dimension_numbers<[1], [0], [0], [1], [0, 0, 1, 1], [], []>} : vector<16x16xf32>, vector<16x16xf32>, vector<16x16xf32> -> vector<16x16xf32>
    %37 = arith.addf %32, %36 : vector<16x16xf32>
    %c1_28 = arith.constant 1 : index
    %c0_29 = arith.constant 0 : index
    %c0_30 = arith.constant 0 : index
    %38 = vector.load %arg15[%c1_28, %c0_29, %c0_30] : memref<2x16x16xf32, #tpu.memory_space<vmem>>, vector<1x16x16xf32>
    %39 = vector.shape_cast %38 : vector<1x16x16xf32> to vector<16x16xf32>
    %cst_31 = arith.constant dense<0.000000e+00> : vector<16x16xf32>
    %40 = tpu.matmul %33, %39, %cst_31 {dimension_numbers = #tpu.dot_dimension_numbers<[1], [0], [0], [1], [0, 0, 1, 1], [], []>} : vector<16x16xf32>, vector<16x16xf32>, vector<16x16xf32> -> vector<16x16xf32>
    %41 = arith.addf %37, %40 : vector<16x16xf32>
    %c0_32 = arith.constant 0 : index
    %c0_33 = arith.constant 0 : index
    %42 = vector.load %arg5[%c0_32, %c0_33] : memref<16x1xf32, #tpu.memory_space<vmem>>, vector<16x1xf32>
    %43 = vector.broadcast %42 : vector<16x1xf32> to vector<16x16xf32>
    %44 = arith.addf %41, %43 : vector<16x16xf32>
    %cst_34 = arith.constant 0.000000e+00 : f32
    %45 = vector.broadcast %cst_34 : f32 to vector<16x16xf32>
    %46 = arith.maximumf %44, %45 : vector<16x16xf32>
    %c0_35 = arith.constant 0 : index
    %c0_36 = arith.constant 0 : index
    %c0_37 = arith.constant 0 : index
    %47 = vector.load %arg19[%c0_35, %c0_36, %c0_37] : memref<2x16x8xf32, #tpu.memory_space<vmem>>, vector<1x16x8xf32>
    %48 = vector.shape_cast %47 : vector<1x16x8xf32> to vector<16x8xf32>
    %cst_38 = arith.constant dense<0.000000e+00> : vector<16x8xf32>
    %49 = tpu.matmul %46, %48, %cst_38 {dimension_numbers = #tpu.dot_dimension_numbers<[1], [0], [0], [1], [0, 0, 1, 1], [], []>} : vector<16x16xf32>, vector<16x8xf32>, vector<16x8xf32> -> vector<16x8xf32>
    %c1_39 = arith.constant 1 : index
    %c0_40 = arith.constant 0 : index
    %c0_41 = arith.constant 0 : index
    %50 = vector.load %arg19[%c1_39, %c0_40, %c0_41] : memref<2x16x8xf32, #tpu.memory_space<vmem>>, vector<1x16x8xf32>
    %51 = vector.shape_cast %50 : vector<1x16x8xf32> to vector<16x8xf32>
    %cst_42 = arith.constant dense<0.000000e+00> : vector<16x8xf32>
    %52 = tpu.matmul %46, %51, %cst_42 {dimension_numbers = #tpu.dot_dimension_numbers<[1], [0], [0], [1], [0, 0, 1, 1], [], []>} : vector<16x16xf32>, vector<16x8xf32>, vector<16x8xf32> -> vector<16x8xf32>
    %53 = arith.maximumf %49, %52 : vector<16x8xf32>
    %c0_43 = arith.constant 0 : index
    %c0_44 = arith.constant 0 : index
    %54 = vector.load %arg6[%c0_43, %c0_44] : memref<24x16xf32, #tpu.memory_space<vmem>>, vector<24x16xf32>
    %cst_45 = arith.constant dense<0.000000e+00> : vector<24x8xf32>
    %55 = tpu.matmul %54, %53, %cst_45 {dimension_numbers = #tpu.dot_dimension_numbers<[1], [0], [0], [1], [0, 0, 1, 1], [], []>} : vector<24x16xf32>, vector<16x8xf32>, vector<24x8xf32> -> vector<24x8xf32>
    %56 = vector.extract_strided_slice %55 {offsets = [0, 0], sizes = [8, 8], strides = [1, 1]} : vector<24x8xf32> to vector<8x8xf32>
    %57 = vector.extract_strided_slice %55 {offsets = [8, 0], sizes = [8, 8], strides = [1, 1]} : vector<24x8xf32> to vector<8x8xf32>
    %58 = vector.extract_strided_slice %55 {offsets = [16, 0], sizes = [8, 8], strides = [1, 1]} : vector<24x8xf32> to vector<8x8xf32>
    %c0_46 = arith.constant 0 : index
    %c0_47 = arith.constant 0 : index
    %c0_48 = arith.constant 0 : index
    %59 = vector.load %arg16[%c0_46, %c0_47, %c0_48] : memref<2x8x8xf32, #tpu.memory_space<vmem>>, vector<1x8x8xf32>
    %60 = vector.shape_cast %59 : vector<1x8x8xf32> to vector<8x8xf32>
    %cst_49 = arith.constant dense<0.000000e+00> : vector<8x8xf32>
    %61 = tpu.matmul %56, %60, %cst_49 {dimension_numbers = #tpu.dot_dimension_numbers<[1], [0], [0], [1], [0, 0, 1, 1], [], []>} : vector<8x8xf32>, vector<8x8xf32>, vector<8x8xf32> -> vector<8x8xf32>
    %62 = arith.addf %57, %61 : vector<8x8xf32>
    %c1_50 = arith.constant 1 : index
    %c0_51 = arith.constant 0 : index
    %c0_52 = arith.constant 0 : index
    %63 = vector.load %arg16[%c1_50, %c0_51, %c0_52] : memref<2x8x8xf32, #tpu.memory_space<vmem>>, vector<1x8x8xf32>
    %64 = vector.shape_cast %63 : vector<1x8x8xf32> to vector<8x8xf32>
    %cst_53 = arith.constant dense<0.000000e+00> : vector<8x8xf32>
    %65 = tpu.matmul %58, %64, %cst_53 {dimension_numbers = #tpu.dot_dimension_numbers<[1], [0], [0], [1], [0, 0, 1, 1], [], []>} : vector<8x8xf32>, vector<8x8xf32>, vector<8x8xf32> -> vector<8x8xf32>
    %66 = arith.addf %62, %65 : vector<8x8xf32>
    %c0_54 = arith.constant 0 : index
    %c0_55 = arith.constant 0 : index
    %67 = vector.load %arg7[%c0_54, %c0_55] : memref<8x1xf32, #tpu.memory_space<vmem>>, vector<8x1xf32>
    %68 = vector.broadcast %67 : vector<8x1xf32> to vector<8x8xf32>
    %69 = arith.addf %66, %68 : vector<8x8xf32>
    %cst_56 = arith.constant 0.000000e+00 : f32
    %70 = vector.broadcast %cst_56 : f32 to vector<8x8xf32>
    %71 = arith.maximumf %69, %70 : vector<8x8xf32>
    %c0_57 = arith.constant 0 : index
    %c0_58 = arith.constant 0 : index
    %c0_59 = arith.constant 0 : index
    %72 = vector.load %arg20[%c0_57, %c0_58, %c0_59] : memref<2x8x4xf32, #tpu.memory_space<vmem>>, vector<1x8x4xf32>
    %73 = vector.shape_cast %72 : vector<1x8x4xf32> to vector<8x4xf32>
    %cst_60 = arith.constant dense<0.000000e+00> : vector<8x4xf32>
    %74 = tpu.matmul %71, %73, %cst_60 {dimension_numbers = #tpu.dot_dimension_numbers<[1], [0], [0], [1], [0, 0, 1, 1], [], []>} : vector<8x8xf32>, vector<8x4xf32>, vector<8x4xf32> -> vector<8x4xf32>
    %c1_61 = arith.constant 1 : index
    %c0_62 = arith.constant 0 : index
    %c0_63 = arith.constant 0 : index
    %75 = vector.load %arg20[%c1_61, %c0_62, %c0_63] : memref<2x8x4xf32, #tpu.memory_space<vmem>>, vector<1x8x4xf32>
    %76 = vector.shape_cast %75 : vector<1x8x4xf32> to vector<8x4xf32>
    %cst_64 = arith.constant dense<0.000000e+00> : vector<8x4xf32>
    %77 = tpu.matmul %71, %76, %cst_64 {dimension_numbers = #tpu.dot_dimension_numbers<[1], [0], [0], [1], [0, 0, 1, 1], [], []>} : vector<8x8xf32>, vector<8x4xf32>, vector<8x4xf32> -> vector<8x4xf32>
    %78 = arith.maximumf %74, %77 : vector<8x4xf32>
    %c0_65 = arith.constant 0 : index
    %c0_66 = arith.constant 0 : index
    %79 = vector.load %arg8[%c0_65, %c0_66] : memref<64x8xf32, #tpu.memory_space<vmem>>, vector<64x8xf32>
    %cst_67 = arith.constant dense<0.000000e+00> : vector<64x4xf32>
    %80 = tpu.matmul %79, %78, %cst_67 {dimension_numbers = #tpu.dot_dimension_numbers<[1], [0], [0], [1], [0, 0, 1, 1], [], []>} : vector<64x8xf32>, vector<8x4xf32>, vector<64x4xf32> -> vector<64x4xf32>
    %81 = vector.extract_strided_slice %80 {offsets = [0, 0], sizes = [16, 4], strides = [1, 1]} : vector<64x4xf32> to vector<16x4xf32>
    %82 = vector.extract_strided_slice %80 {offsets = [16, 0], sizes = [16, 4], strides = [1, 1]} : vector<64x4xf32> to vector<16x4xf32>
    %83 = vector.extract_strided_slice %80 {offsets = [32, 0], sizes = [16, 4], strides = [1, 1]} : vector<64x4xf32> to vector<16x4xf32>
    %84 = vector.extract_strided_slice %80 {offsets = [48, 0], sizes = [16, 4], strides = [1, 1]} : vector<64x4xf32> to vector<16x4xf32>
    %c0_68 = arith.constant 0 : index
    %c0_69 = arith.constant 0 : index
    %c0_70 = arith.constant 0 : index
    %85 = vector.load %arg17[%c0_68, %c0_69, %c0_70] : memref<2x4x4xf32, #tpu.memory_space<vmem>>, vector<1x4x4xf32>
    %86 = vector.shape_cast %85 : vector<1x4x4xf32> to vector<4x4xf32>
    %cst_71 = arith.constant dense<0.000000e+00> : vector<16x4xf32>
    %87 = tpu.matmul %84, %86, %cst_71 {dimension_numbers = #tpu.dot_dimension_numbers<[1], [0], [0], [1], [0, 0, 1, 1], [], []>} : vector<16x4xf32>, vector<4x4xf32>, vector<16x4xf32> -> vector<16x4xf32>
    %88 = arith.addf %82, %87 : vector<16x4xf32>
    %c1_72 = arith.constant 1 : index
    %c0_73 = arith.constant 0 : index
    %c0_74 = arith.constant 0 : index
    %89 = vector.load %arg17[%c1_72, %c0_73, %c0_74] : memref<2x4x4xf32, #tpu.memory_space<vmem>>, vector<1x4x4xf32>
    %90 = vector.shape_cast %89 : vector<1x4x4xf32> to vector<4x4xf32>
    %cst_75 = arith.constant dense<0.000000e+00> : vector<16x4xf32>
    %91 = tpu.matmul %81, %90, %cst_75 {dimension_numbers = #tpu.dot_dimension_numbers<[1], [0], [0], [1], [0, 0, 1, 1], [], []>} : vector<16x4xf32>, vector<4x4xf32>, vector<16x4xf32> -> vector<16x4xf32>
    %92 = arith.addf %83, %91 : vector<16x4xf32>
    %c0_76 = arith.constant 0 : index
    %c0_77 = arith.constant 0 : index
    %c0_78 = arith.constant 0 : index
    %93 = vector.load %arg21[%c0_76, %c0_77, %c0_78] : memref<2x4x8xf32, #tpu.memory_space<vmem>>, vector<1x4x8xf32>
    %94 = vector.shape_cast %93 : vector<1x4x8xf32> to vector<4x8xf32>
    %cst_79 = arith.constant dense<0.000000e+00> : vector<16x8xf32>
    %95 = tpu.matmul %88, %94, %cst_79 {dimension_numbers = #tpu.dot_dimension_numbers<[1], [0], [0], [1], [0, 0, 1, 1], [], []>} : vector<16x4xf32>, vector<4x8xf32>, vector<16x8xf32> -> vector<16x8xf32>
    %c1_80 = arith.constant 1 : index
    %c0_81 = arith.constant 0 : index
    %c0_82 = arith.constant 0 : index
    %96 = vector.load %arg21[%c1_80, %c0_81, %c0_82] : memref<2x4x8xf32, #tpu.memory_space<vmem>>, vector<1x4x8xf32>
    %97 = vector.shape_cast %96 : vector<1x4x8xf32> to vector<4x8xf32>
    %cst_83 = arith.constant dense<0.000000e+00> : vector<16x8xf32>
    %98 = tpu.matmul %92, %97, %cst_83 {dimension_numbers = #tpu.dot_dimension_numbers<[1], [0], [0], [1], [0, 0, 1, 1], [], []>} : vector<16x4xf32>, vector<4x8xf32>, vector<16x8xf32> -> vector<16x8xf32>
    %99 = arith.addf %95, %98 : vector<16x8xf32>
    %c0_84 = arith.constant 0 : index
    %c0_85 = arith.constant 0 : index
    %100 = vector.load %arg9[%c0_84, %c0_85] : memref<16x1xf32, #tpu.memory_space<vmem>>, vector<16x1xf32>
    %101 = vector.broadcast %100 : vector<16x1xf32> to vector<16x8xf32>
    %102 = arith.addf %99, %101 : vector<16x8xf32>
    %cst_86 = arith.constant 0.000000e+00 : f32
    %103 = vector.broadcast %cst_86 : f32 to vector<16x8xf32>
    %104 = arith.maximumf %102, %103 : vector<16x8xf32>
    %c0_87 = arith.constant 0 : index
    %c0_88 = arith.constant 0 : index
    %105 = vector.load %arg10[%c0_87, %c0_88] : memref<128x16xf32, #tpu.memory_space<vmem>>, vector<128x16xf32>
    %cst_89 = arith.constant dense<0.000000e+00> : vector<128x8xf32>
    %106 = tpu.matmul %105, %104, %cst_89 {dimension_numbers = #tpu.dot_dimension_numbers<[1], [0], [0], [1], [0, 0, 1, 1], [], []>} : vector<128x16xf32>, vector<16x8xf32>, vector<128x8xf32> -> vector<128x8xf32>
    %107 = vector.extract_strided_slice %106 {offsets = [0, 0], sizes = [32, 8], strides = [1, 1]} : vector<128x8xf32> to vector<32x8xf32>
    %108 = vector.extract_strided_slice %106 {offsets = [32, 0], sizes = [32, 8], strides = [1, 1]} : vector<128x8xf32> to vector<32x8xf32>
    %109 = vector.extract_strided_slice %106 {offsets = [64, 0], sizes = [32, 8], strides = [1, 1]} : vector<128x8xf32> to vector<32x8xf32>
    %110 = vector.extract_strided_slice %106 {offsets = [96, 0], sizes = [32, 8], strides = [1, 1]} : vector<128x8xf32> to vector<32x8xf32>
    %c0_90 = arith.constant 0 : index
    %c0_91 = arith.constant 0 : index
    %c0_92 = arith.constant 0 : index
    %111 = vector.load %arg16[%c0_90, %c0_91, %c0_92] : memref<2x8x8xf32, #tpu.memory_space<vmem>>, vector<1x8x8xf32>
    %112 = vector.shape_cast %111 : vector<1x8x8xf32> to vector<8x8xf32>
    %cst_93 = arith.constant dense<0.000000e+00> : vector<32x8xf32>
    %113 = tpu.matmul %110, %112, %cst_93 {dimension_numbers = #tpu.dot_dimension_numbers<[1], [0], [0], [1], [0, 0, 1, 1], [], []>} : vector<32x8xf32>, vector<8x8xf32>, vector<32x8xf32> -> vector<32x8xf32>
    %114 = arith.addf %108, %113 : vector<32x8xf32>
    %c1_94 = arith.constant 1 : index
    %c0_95 = arith.constant 0 : index
    %c0_96 = arith.constant 0 : index
    %115 = vector.load %arg16[%c1_94, %c0_95, %c0_96] : memref<2x8x8xf32, #tpu.memory_space<vmem>>, vector<1x8x8xf32>
    %116 = vector.shape_cast %115 : vector<1x8x8xf32> to vector<8x8xf32>
    %cst_97 = arith.constant dense<0.000000e+00> : vector<32x8xf32>
    %117 = tpu.matmul %107, %116, %cst_97 {dimension_numbers = #tpu.dot_dimension_numbers<[1], [0], [0], [1], [0, 0, 1, 1], [], []>} : vector<32x8xf32>, vector<8x8xf32>, vector<32x8xf32> -> vector<32x8xf32>
    %118 = arith.addf %109, %117 : vector<32x8xf32>
    %c0_98 = arith.constant 0 : index
    %c0_99 = arith.constant 0 : index
    %c0_100 = arith.constant 0 : index
    %119 = vector.load %arg22[%c0_98, %c0_99, %c0_100] : memref<2x8x16xf32, #tpu.memory_space<vmem>>, vector<1x8x16xf32>
    %120 = vector.shape_cast %119 : vector<1x8x16xf32> to vector<8x16xf32>
    %cst_101 = arith.constant dense<0.000000e+00> : vector<32x16xf32>
    %121 = tpu.matmul %114, %120, %cst_101 {dimension_numbers = #tpu.dot_dimension_numbers<[1], [0], [0], [1], [0, 0, 1, 1], [], []>} : vector<32x8xf32>, vector<8x16xf32>, vector<32x16xf32> -> vector<32x16xf32>
    %c1_102 = arith.constant 1 : index
    %c0_103 = arith.constant 0 : index
    %c0_104 = arith.constant 0 : index
    %122 = vector.load %arg22[%c1_102, %c0_103, %c0_104] : memref<2x8x16xf32, #tpu.memory_space<vmem>>, vector<1x8x16xf32>
    %123 = vector.shape_cast %122 : vector<1x8x16xf32> to vector<8x16xf32>
    %cst_105 = arith.constant dense<0.000000e+00> : vector<32x16xf32>
    %124 = tpu.matmul %118, %123, %cst_105 {dimension_numbers = #tpu.dot_dimension_numbers<[1], [0], [0], [1], [0, 0, 1, 1], [], []>} : vector<32x8xf32>, vector<8x16xf32>, vector<32x16xf32> -> vector<32x16xf32>
    %125 = arith.addf %121, %124 : vector<32x16xf32>
    %c0_106 = arith.constant 0 : index
    %c0_107 = arith.constant 0 : index
    %126 = vector.load %arg11[%c0_106, %c0_107] : memref<32x1xf32, #tpu.memory_space<vmem>>, vector<32x1xf32>
    %127 = vector.broadcast %126 : vector<32x1xf32> to vector<32x16xf32>
    %128 = arith.addf %125, %127 : vector<32x16xf32>
    %cst_108 = arith.constant 0.000000e+00 : f32
    %129 = vector.broadcast %cst_108 : f32 to vector<32x16xf32>
    %130 = arith.maximumf %128, %129 : vector<32x16xf32>
    %c0_109 = arith.constant 0 : index
    %c0_110 = arith.constant 0 : index
    %c0_111 = arith.constant 0 : index
    %131 = vector.load %arg12[%c0_109, %c0_110, %c0_111] : memref<4x1x32xf32, #tpu.memory_space<vmem>>, vector<1x1x32xf32>
    %132 = vector.shape_cast %131 : vector<1x1x32xf32> to vector<1x32xf32>
    %cst_112 = arith.constant dense<0.000000e+00> : vector<1x16xf32>
    %133 = tpu.matmul %132, %130, %cst_112 {dimension_numbers = #tpu.dot_dimension_numbers<[1], [0], [0], [1], [0, 0, 1, 1], [], []>} : vector<1x32xf32>, vector<32x16xf32>, vector<1x16xf32> -> vector<1x16xf32>
    %c1_113 = arith.constant 1 : index
    %c0_114 = arith.constant 0 : index
    %c0_115 = arith.constant 0 : index
    %134 = vector.load %arg12[%c1_113, %c0_114, %c0_115] : memref<4x1x32xf32, #tpu.memory_space<vmem>>, vector<1x1x32xf32>
    %135 = vector.shape_cast %134 : vector<1x1x32xf32> to vector<1x32xf32>
    %cst_116 = arith.constant dense<0.000000e+00> : vector<1x16xf32>
    %136 = tpu.matmul %135, %130, %cst_116 {dimension_numbers = #tpu.dot_dimension_numbers<[1], [0], [0], [1], [0, 0, 1, 1], [], []>} : vector<1x32xf32>, vector<32x16xf32>, vector<1x16xf32> -> vector<1x16xf32>
    %c2 = arith.constant 2 : index
    %c0_117 = arith.constant 0 : index
    %c0_118 = arith.constant 0 : index
    %137 = vector.load %arg12[%c2, %c0_117, %c0_118] : memref<4x1x32xf32, #tpu.memory_space<vmem>>, vector<1x1x32xf32>
    %138 = vector.shape_cast %137 : vector<1x1x32xf32> to vector<1x32xf32>
    %cst_119 = arith.constant dense<0.000000e+00> : vector<1x16xf32>
    %139 = tpu.matmul %138, %130, %cst_119 {dimension_numbers = #tpu.dot_dimension_numbers<[1], [0], [0], [1], [0, 0, 1, 1], [], []>} : vector<1x32xf32>, vector<32x16xf32>, vector<1x16xf32> -> vector<1x16xf32>
    %c3 = arith.constant 3 : index
    %c0_120 = arith.constant 0 : index
    %c0_121 = arith.constant 0 : index
    %140 = vector.load %arg12[%c3, %c0_120, %c0_121] : memref<4x1x32xf32, #tpu.memory_space<vmem>>, vector<1x1x32xf32>
    %141 = vector.shape_cast %140 : vector<1x1x32xf32> to vector<1x32xf32>
    %cst_122 = arith.constant dense<0.000000e+00> : vector<1x16xf32>
    %142 = tpu.matmul %141, %130, %cst_122 {dimension_numbers = #tpu.dot_dimension_numbers<[1], [0], [0], [1], [0, 0, 1, 1], [], []>} : vector<1x32xf32>, vector<32x16xf32>, vector<1x16xf32> -> vector<1x16xf32>
    %c0_123 = arith.constant 0 : index
    %c0_124 = arith.constant 0 : index
    %c0_125 = arith.constant 0 : index
    %143 = vector.load %arg15[%c0_123, %c0_124, %c0_125] : memref<2x16x16xf32, #tpu.memory_space<vmem>>, vector<1x16x16xf32>
    %144 = vector.shape_cast %143 : vector<1x16x16xf32> to vector<16x16xf32>
    %cst_126 = arith.constant dense<0.000000e+00> : vector<1x16xf32>
    %145 = tpu.matmul %142, %144, %cst_126 {dimension_numbers = #tpu.dot_dimension_numbers<[1], [0], [0], [1], [0, 0, 1, 1], [], []>} : vector<1x16xf32>, vector<16x16xf32>, vector<1x16xf32> -> vector<1x16xf32>
    %146 = arith.addf %136, %145 : vector<1x16xf32>
    %c1_127 = arith.constant 1 : index
    %c0_128 = arith.constant 0 : index
    %c0_129 = arith.constant 0 : index
    %147 = vector.load %arg15[%c1_127, %c0_128, %c0_129] : memref<2x16x16xf32, #tpu.memory_space<vmem>>, vector<1x16x16xf32>
    %148 = vector.shape_cast %147 : vector<1x16x16xf32> to vector<16x16xf32>
    %cst_130 = arith.constant dense<0.000000e+00> : vector<1x16xf32>
    %149 = tpu.matmul %133, %148, %cst_130 {dimension_numbers = #tpu.dot_dimension_numbers<[1], [0], [0], [1], [0, 0, 1, 1], [], []>} : vector<1x16xf32>, vector<16x16xf32>, vector<1x16xf32> -> vector<1x16xf32>
    %150 = arith.addf %139, %149 : vector<1x16xf32>
    %c0_131 = arith.constant 0 : index
    %c0_132 = arith.constant 0 : index
    %c0_133 = arith.constant 0 : index
    %151 = vector.load %arg23[%c0_131, %c0_132, %c0_133] : memref<2x16x32xf32, #tpu.memory_space<vmem>>, vector<1x16x32xf32>
    %152 = vector.shape_cast %151 : vector<1x16x32xf32> to vector<16x32xf32>
    %cst_134 = arith.constant dense<0.000000e+00> : vector<1x32xf32>
    %153 = tpu.matmul %146, %152, %cst_134 {dimension_numbers = #tpu.dot_dimension_numbers<[1], [0], [0], [1], [0, 0, 1, 1], [], []>} : vector<1x16xf32>, vector<16x32xf32>, vector<1x32xf32> -> vector<1x32xf32>
    %c1_135 = arith.constant 1 : index
    %c0_136 = arith.constant 0 : index
    %c0_137 = arith.constant 0 : index
    %154 = vector.load %arg23[%c1_135, %c0_136, %c0_137] : memref<2x16x32xf32, #tpu.memory_space<vmem>>, vector<1x16x32xf32>
    %155 = vector.shape_cast %154 : vector<1x16x32xf32> to vector<16x32xf32>
    %cst_138 = arith.constant dense<0.000000e+00> : vector<1x32xf32>
    %156 = tpu.matmul %150, %155, %cst_138 {dimension_numbers = #tpu.dot_dimension_numbers<[1], [0], [0], [1], [0, 0, 1, 1], [], []>} : vector<1x16xf32>, vector<16x32xf32>, vector<1x32xf32> -> vector<1x32xf32>
    %157 = arith.addf %153, %156 : vector<1x32xf32>
    %c0_139 = arith.constant 0 : index
    %c0_140 = arith.constant 0 : index
    %158 = vector.load %arg13[%c0_139, %c0_140] : memref<1x1xf32, #tpu.memory_space<vmem>>, vector<1x1xf32>
    %159 = vector.broadcast %158 : vector<1x1xf32> to vector<1x32xf32>
    %160 = arith.addf %157, %159 : vector<1x32xf32>
    %c0_141 = arith.constant 0 : index
    %c0_142 = arith.constant 0 : index
    %c0_143 = arith.constant 0 : index
    %161 = vector.load %arg24[%c0_141, %c0_142, %c0_143] : memref<1x1x32xf32, #tpu.memory_space<vmem>>, vector<1x1x32xf32>
    %162 = vector.shape_cast %161 : vector<1x1x32xf32> to vector<1x32xf32>
    %163 = vector.shape_cast %160 : vector<1x32xf32> to vector<1x1x32xf32>
    tpu.vector_store %arg24[%c0_141, %c0_142, %c0_143], %163 {strides = array<i32>} : memref<1x1x32xf32, #tpu.memory_space<vmem>>, vector<1x1x32xf32>,
    return
  }
  func.func @transform_0(%arg0: i32) -> (i32, i32, i32) {
    %c0_i32 = arith.constant 0 : i32
    %c0_i32_0 = arith.constant 0 : i32
    %c0_i32_1 = arith.constant 0 : i32
    return %arg0, %c0_i32, %c0_i32_0 : i32, i32, i32
  }
  func.func @transform_1(%arg0: i32) -> (i32, i32) {
    %c0_i32 = arith.constant 0 : i32
    %c0_i32_0 = arith.constant 0 : i32
    %c0_i32_1 = arith.constant 0 : i32
    return %c0_i32, %c0_i32_0 : i32, i32
  }
  func.func @transform_2(%arg0: i32) -> (i32, i32) {
    %c0_i32 = arith.constant 0 : i32
    %c0_i32_0 = arith.constant 0 : i32
    %c0_i32_1 = arith.constant 0 : i32
    return %c0_i32, %c0_i32_0 : i32, i32
  }
  func.func @transform_3(%arg0: i32) -> (i32, i32) {
    %c0_i32 = arith.constant 0 : i32
    %c0_i32_0 = arith.constant 0 : i32
    %c0_i32_1 = arith.constant 0 : i32
    return %c0_i32, %c0_i32_0 : i32, i32
  }
  func.func @transform_4(%arg0: i32) -> (i32, i32) {
    %c0_i32 = arith.constant 0 : i32
    %c0_i32_0 = arith.constant 0 : i32
    %c0_i32_1 = arith.constant 0 : i32
    return %c0_i32, %c0_i32_0 : i32, i32
  }
  func.func @transform_5(%arg0: i32) -> (i32, i32) {
    %c0_i32 = arith.constant 0 : i32
    %c0_i32_0 = arith.constant 0 : i32
    %c0_i32_1 = arith.constant 0 : i32
    return %c0_i32, %c0_i32_0 : i32, i32
  }
  func.func @transform_6(%arg0: i32) -> (i32, i32) {
    %c0_i32 = arith.constant 0 : i32
    %c0_i32_0 = arith.constant 0 : i32
    %c0_i32_1 = arith.constant 0 : i32
    return %c0_i32, %c0_i32_0 : i32, i32
  }
  func.func @transform_7(%arg0: i32) -> (i32, i32) {
    %c0_i32 = arith.constant 0 : i32
    %c0_i32_0 = arith.constant 0 : i32
    %c0_i32_1 = arith.constant 0 : i32
    return %c0_i32, %c0_i32_0 : i32, i32
  }
  func.func @transform_8(%arg0: i32) -> (i32, i32) {
    %c0_i32 = arith.constant 0 : i32
    %c0_i32_0 = arith.constant 0 : i32
    %c0_i32_1 = arith.constant 0 : i32
    return %c0_i32, %c0_i32_0 : i32, i32
  }
  func.func @transform_9(%arg0: i32) -> (i32, i32) {
    %c0_i32 = arith.constant 0 : i32
    %c0_i32_0 = arith.constant 0 : i32
    %c0_i32_1 = arith.constant 0 : i32
    return %c0_i32, %c0_i32_0 : i32, i32
  }
  func.func @transform_10(%arg0: i32) -> (i32, i32) {
    %c0_i32 = arith.constant 0 : i32
    %c0_i32_0 = arith.constant 0 : i32
    %c0_i32_1 = arith.constant 0 : i32
    return %c0_i32, %c0_i32_0 : i32, i32
  }
  func.func @transform_11(%arg0: i32) -> (i32, i32, i32) {
    %c0_i32 = arith.constant 0 : i32
    %c0_i32_0 = arith.constant 0 : i32
    %c0_i32_1 = arith.constant 0 : i32
    %c0_i32_2 = arith.constant 0 : i32
    return %c0_i32, %c0_i32_0, %c0_i32_1 : i32, i32, i32
  }
  func.func @transform_12(%arg0: i32) -> (i32, i32) {
    %c0_i32 = arith.constant 0 : i32
    %c0_i32_0 = arith.constant 0 : i32
    %c0_i32_1 = arith.constant 0 : i32
    return %c0_i32, %c0_i32_0 : i32, i32
  }
  func.func @transform_13(%arg0: i32) -> (i32, i32, i32) {
    %c0_i32 = arith.constant 0 : i32
    %c0_i32_0 = arith.constant 0 : i32
    %c0_i32_1 = arith.constant 0 : i32
    %c0_i32_2 = arith.constant 0 : i32
    return %c0_i32, %c0_i32_0, %c0_i32_1 : i32, i32, i32
  }
  func.func @transform_14(%arg0: i32) -> (i32, i32, i32) {
    %c0_i32 = arith.constant 0 : i32
    %c0_i32_0 = arith.constant 0 : i32
    %c0_i32_1 = arith.constant 0 : i32
    %c0_i32_2 = arith.constant 0 : i32
    return %c0_i32, %c0_i32_0, %c0_i32_1 : i32, i32, i32
  }
  func.func @transform_15(%arg0: i32) -> (i32, i32, i32) {
    %c0_i32 = arith.constant 0 : i32
    %c0_i32_0 = arith.constant 0 : i32
    %c0_i32_1 = arith.constant 0 : i32
    %c0_i32_2 = arith.constant 0 : i32
    return %c0_i32, %c0_i32_0, %c0_i32_1 : i32, i32, i32
  }
  func.func @transform_16(%arg0: i32) -> (i32, i32, i32) {
    %c0_i32 = arith.constant 0 : i32
    %c0_i32_0 = arith.constant 0 : i32
    %c0_i32_1 = arith.constant 0 : i32
    %c0_i32_2 = arith.constant 0 : i32
    return %c0_i32, %c0_i32_0, %c0_i32_1 : i32, i32, i32
  }
  func.func @transform_17(%arg0: i32) -> (i32, i32, i32) {
    %c0_i32 = arith.constant 0 : i32
    %c0_i32_0 = arith.constant 0 : i32
    %c0_i32_1 = arith.constant 0 : i32
    %c0_i32_2 = arith.constant 0 : i32
    return %c0_i32, %c0_i32_0, %c0_i32_1 : i32, i32, i32
  }
  func.func @transform_18(%arg0: i32) -> (i32, i32, i32) {
    %c0_i32 = arith.constant 0 : i32
    %c0_i32_0 = arith.constant 0 : i32
    %c0_i32_1 = arith.constant 0 : i32
    %c0_i32_2 = arith.constant 0 : i32
    return %c0_i32, %c0_i32_0, %c0_i32_1 : i32, i32, i32
  }
  func.func @transform_19(%arg0: i32) -> (i32, i32, i32) {
    %c0_i32 = arith.constant 0 : i32
    %c0_i32_0 = arith.constant 0 : i32
    %c0_i32_1 = arith.constant 0 : i32
    %c0_i32_2 = arith.constant 0 : i32
    return %c0_i32, %c0_i32_0, %c0_i32_1 : i32, i32, i32
  }
  func.func @transform_20(%arg0: i32) -> (i32, i32, i32) {
    %c0_i32 = arith.constant 0 : i32
    %c0_i32_0 = arith.constant 0 : i32
    %c0_i32_1 = arith.constant 0 : i32
    %c0_i32_2 = arith.constant 0 : i32
    return %c0_i32, %c0_i32_0, %c0_i32_1 : i32, i32, i32
  }
  func.func @transform_21(%arg0: i32) -> (i32, i32, i32) {
    %c0_i32 = arith.constant 0 : i32
    %c0_i32_0 = arith.constant 0 : i32
    %c0_i32_1 = arith.constant 0 : i32
    %c0_i32_2 = arith.constant 0 : i32
    return %c0_i32, %c0_i32_0, %c0_i32_1 : i32, i32, i32
  }
  func.func @transform_22(%arg0: i32) -> (i32, i32, i32) {
    %c0_i32 = arith.constant 0 : i32
    %c0_i32_0 = arith.constant 0 : i32
    %c0_i32_1 = arith.constant 0 : i32
    %c0_i32_2 = arith.constant 0 : i32
    return %c0_i32, %c0_i32_0, %c0_i32_1 : i32, i32, i32
  }
  func.func @transform_23(%arg0: i32) -> (i32, i32, i32) {
    %c0_i32 = arith.constant 0 : i32
    %c0_i32_0 = arith.constant 0 : i32
    %c0_i32_1 = arith.constant 0 : i32
    return %arg0, %c0_i32, %c0_i32_0 : i32, i32, i32
  }
}

</mosaic_0001>

<bundles_post_ra>
// kernel: tpu_custom_call.1
= control target key start
LH: loop header
LB: loop body
LE: loop exit
PB: predicated region body
PF: predicated region fallthrough
CT: control target
= control target key end

     0   :  { %6 = vsyncpa [#allocation3], 0  ;;  %s128_s0 = inlined_call_operand.hbm [shape: f32[8,128], index: 0, kind: input, shape index: {}]   ;;  %s129_s1 = inlined_call_operand.hbm [shape: f32[8,128], index: 1, kind: output, shape index: {}]  }
   0x1   :  { %7 = vsyncpa [#allocation4], 0  ;;  %s91_s6 = smov [#allocation2]   ;;  %s43_s10 = scalar_lea.hbm %s128_s0, 128 }
   0x2   :  { %s14_s7 = sshll.u32 %s91_s6, 4  ;;  %p44_p0 = scmp.ne.s32.totalorder %s128_s0, %s43_s10  ;;  %s15_s7 = int_to_ptr.vmem [resolvable:$true] %s14_s7 }
   0x3   :  { %p47_p1 = scmp.lt.u32.totalorder %s43_s10, %s128_s0 }
   0x5   :  { %p49_p2 = pnand %p47_p1, %p44_p0 }
   0x7   :  { %52 = shalt.err (!%p49_p2)
}
   0x8   :  { %s53_s15 = scalar_lea.vmem %s15_s7, 128  ;;  %p58_p4 = scmp.lt.s32.totalorder %s15_s7, %s15_s7 }
   0x9   :  { %p54_p3 = scmp.ne.s32.totalorder %s15_s7, %s53_s15  ;;  %p59_p5 = scmp.lt.s32.totalorder %s53_s15, %s53_s15 }
   0xb   :  { %p60_p6 = por %p59_p5, %p58_p4 }
   0xd   :  { %p61_p7 = pnand %p60_p6, %p54_p3 }
   0xf   :  { %64 = shalt.err (!%p61_p7)
}
  0x10   :  { %17 = dma.hbm_to_vmem [thread:$0]  %s128_s0, 128, %s15_s7, [#allocation3]  }
  0x11   :  { %87 = dma.done.wait [#allocation3], 128  }
  0x12   :  { %88 = vsyncadd [#allocation3], 4294967168  ;;  %v21_v0 = vld [vmem:[#allocation2] sm:$0xff]  ;;  %s92_s18 = smov 1   ;;  %s93_s19 = smov [#allocation5]  }
  0x13   :  { %22 = vrot.lane.b32.xlu0 %v21_v0, %s92_s18  ;;  %s31_s20 = sshll.u32 %s93_s19, 4  ;;  %s32_s20 = int_to_ptr.vmem [resolvable:$true] %s31_s20 }
  0x14   :  { %s65_s21 = scalar_lea.vmem %s32_s20, 128  ;;  %p70_p9 = scmp.lt.s32.totalorder %s32_s20, %s32_s20 }
  0x15   :  { %p66_p8 = scmp.ne.s32.totalorder %s32_s20, %s65_s21  ;;  %p71_p10 = scmp.lt.s32.totalorder %s65_s21, %s65_s21 }
  0x17   :  { %p72_p11 = por %p71_p10, %p70_p9 }
  0x19   :  { %p73_p12 = pnand %p72_p11, %p66_p8 }
  0x85   :  { %v23_v1 = vpop.permute.xlu0 %22 }
  0x86   :  { %24 = vst [vmem:[#allocation5] sm:$0xff] %v23_v1 }
  0x87   :  { %76 = shalt.err (!%p73_p12)
}
  0x88   :  { %s77_s0 = scalar_lea.hbm %s129_s1, 128 }
  0x89   :  { %p78_p13 = scmp.ne.s32.totalorder %s129_s1, %s77_s0  ;;  %p81_p0 = scmp.lt.u32.totalorder %s77_s0, %s129_s1 }
  0x8b   :  { %p83_p1 = pnand %p81_p0, %p78_p13 }
  0x8d   :  { %86 = shalt.err (!%p83_p1)
}
  0x8e   :  { %34 = dma.vmem_to_hbm [thread:$0]  %s32_s20, 128, %s129_s1, [#allocation4]  }
  0x8f   :  { %89 = dma.done.wait [#allocation4], 128  }
  0x90   :  { %90 = vsyncadd [#allocation4], 4294967168 }
  0x91   :  { %38 = vsyncpa [#allocation3], 1 }
  0x92   :  { %39 = vsyncpa [#allocation4], 1 }

// kernel: tpu_custom_call.1
= control target key start
LH: loop header
LB: loop body
LE: loop exit
PB: predicated region body
PF: predicated region fallthrough
CT: control target
= control target key end

     0   :  { %s5445_s0 = inlined_call_operand.vmem [shape: f32[2,1,32], index: 0, kind: input, shape index: {}]   ;;  %s5446_s1 = inlined_call_operand.vmem [shape: f32[96,1], index: 1, kind: input, shape index: {}]   ;;  %s5447_s2 = inlined_call_operand.vmem [shape: f32[32,1], index: 2, kind: input, shape index: {}]   ;;  %s5448_s3 = inlined_call_operand.vmem [shape: f32[48,32], index: 3, kind: input, shape index: {}]   ;;  %s5449_s4 = inlined_call_operand.vmem [shape: f32[16,1], index: 4, kind: input, shape index: {}]   ;;  %s5450_s5 = inlined_call_operand.vmem [shape: f32[24,16], index: 5, kind: input, shape index: {}]   ;;  %s5451_s6 = inlined_call_operand.vmem [shape: f32[8,1], index: 6, kind: input, shape index: {}]   ;;  %s5452_s7 = inlined_call_operand.vmem [shape: f32[64,8], index: 7, kind: input, shape index: {}]   ;;  %s5453_s8 = inlined_call_operand.vmem [shape: f32[16,1], index: 8, kind: input, shape index: {}]   ;;  %s5454_s9 = inlined_call_operand.vmem [shape: f32[128,16], index: 9, kind: input, shape index: {}]   ;;  %s5455_s10 = inlined_call_operand.vmem [shape: f32[32,1], index: 10, kind: input, shape index: {}]   ;;  %s5456_s11 = inlined_call_operand.vmem [shape: f32[4,1,32], index: 11, kind: input, shape index: {}]   ;;  %s5457_s12 = inlined_call_operand.<no memory space> [shape: f32[1,1], index: 12, kind: input, shape index: {}]   ;;  %s5458_s13 = inlined_call_operand.vmem [shape: f32[2,32,32], index: 13, kind: input, shape index: {}]   ;;  %s5459_s14 = inlined_call_operand.vmem [shape: f32[2,16,16], index: 14, kind: input, shape index: {}]   ;;  %s5460_s15 = inlined_call_operand.vmem [shape: f32[2,8,8], index: 15, kind: input, shape index: {}]   ;;  %s5461_s16 = inlined_call_operand.vmem [shape: f32[2,4,4], index: 16, kind: input, shape index: {}]   ;;  %s5462_s17 = inlined_call_operand.vmem [shape: f32[2,32,16], index: 17, kind: input, shape index: {}]   ;;  %s5463_s18 = inlined_call_operand.vmem [shape: f32[2,16,8], index: 18, kind: input, shape index: {}]   ;;  %s5464_s19 = inlined_call_operand.vmem [shape: f32[2,8,4], index: 19, kind: input, shape index: {}]   ;;  %s5465_s20 = inlined_call_operand.vmem [shape: f32[2,4,8], index: 20, kind: input, shape index: {}]   ;;  %s5466_s21 = inlined_call_operand.vmem [shape: f32[2,8,16], index: 21, kind: input, shape index: {}]   ;;  %s5467_s22 = inlined_call_operand.vmem [shape: f32[2,16,32], index: 22, kind: input, shape index: {}]   ;;  %s5468_s23 = inlined_call_operand.hbm [shape: f32[2,1,32], index: 23, kind: output, shape index: {}]  }
   0x1   :  { %5484 = sst [smem:[#allocation12_spill]] %s5445_s0  ;;  %v28_v0 = vstv %s5457_s12 }
   0x2   :  { %5485 = sst [smem:[#allocation13_spill]] %s5446_s1  ;;  %29 = vst [vmem:[#allocation2] sm:$0x1] %v28_v0 }
   0x3   :  { %5486 = sst [smem:[#allocation14_spill]] %s5447_s2 }
   0x4   :  { %5487 = sst [smem:[#allocation15_spill]] %s5448_s3 }
   0x5   :  { %5488 = sst [smem:[#allocation16_spill]] %s5449_s4 }
   0x6   :  { %5489 = sst [smem:[#allocation17_spill]] %s5450_s5 }
   0x7   :  { %5490 = sst [smem:[#allocation18_spill]] %s5451_s6 }
   0x8   :  { %5491 = sst [smem:[#allocation19_spill]] %s5452_s7 }
   0x9   :  { %5492 = sst [smem:[#allocation20_spill]] %s5453_s8 }
   0xa   :  { %30 = vsyncpa [#allocation4], 0 }
   0xb   :  { %32 = vsyncpa [#allocation4 + $0x1], 0  ;;  %s4877_s24 = smov 0   ;;  %s4879_s25 = smov 0  }
   0xc   :  { %s4881_s5 = smov 0   ;;  %s4883_s1 = smov 0  }
   0xd LB: > { %5493 = sst [smem:[#allocation6_spill]] %s4735_s24  ;;  %s4898_s12 = sadd.s32 4294967295, %s4747_s1   ;;  %s4747_s1 = sphi %s4883_s1, %s5513_s1   ;;  %s4743_s5 = sphi %s4881_s5, %s5515_s5   ;;  %s4739_s25 = sphi %s4879_s25, %s5517_s25   ;;  %s4735_s24 = sphi %s4877_s24, %s5516_s24  }
   0xe   : > { %5494 = sst [smem:[#allocation7_spill]] %s4743_s5  ;;  %s3918_s26 = sadd.s32 4294967294, %s4747_s1  }
   0xf   : > { %5495 = sst [smem:[#allocation8_spill]] %s4747_s1  ;;  %s4902_s2 = sadd.s32 1, %s4747_s1  }
  0x10   : > { %5496 = sst [smem:[#allocation9_spill]] %s4902_s2  ;;  %s533_s6 = sadd.s32 1, %s4743_s5 }
  0x11   : > { %s530_s27 = ssub.s32 %s4747_s1, %s4902_s2  ;;  %p543_p0 = scmp.ne.s32.totalorder %s4743_s5, %s4739_s25 }
  0x12   : > { %p531_p1 = scmp.eq.s32.totalorder %s530_s27, 0  ;;  %p544_p2 = scmp.eq.s32.totalorder %s4898_s12, 1 }
  0x13   : > { %p549_p3 = scmp.ne.s32.totalorder %s4739_s25, %s4735_s24  ;;  %p550_p4 = scmp.eq.s32.totalorder %s3918_s26, 1 }
  0x14   : > { %s4913_s7 = scalar_select %p531_p1, %s4743_s5, %s533_s6  }
  0x15   : > { %p4915_p5 = por %p544_p2, %p543_p0  ;;  %p4919_p6 = por %p550_p4, %p549_p3 }
  0x16   : > { %5497 = sst [smem:[#allocation10_spill]] %s4913_s7  ;;  %p3921_p7 = scmp.ge.s32.totalorder %s4747_s1, 1 }
  0x17   : > { %s5499_s29 = scalar_select %p4919_p6, 1, 0 }
  0x18   : > { %p640_p8 = scmp.lt.s32.totalorder %s4747_s1, 3 }
  0x19   : > { %5500 = sst [smem:[#allocation11_spill]] %s5499_s29 }
  0x1a   : > { %p641_p9 = pnand %p3921_p7, %p640_p8 }
  0x1b   : > { %s5501_s4 = sld [smem:[#allocation13_spill]] (!%p641_p9)  ;;  %v4749_v3 = vmov (!%p641_p9), 0   ;;  %v795_v8 = vld [vmem:[%s5458_s13] sm:$0xff] (!%p641_p9)  ;;  %v796_v9 = vld [vmem:[%s5458_s13 + $0x8] sm:$0xff] (!%p641_p9)  ;;  %v797_v10 = vld [vmem:[%s5458_s13 + $0x10] sm:$0xff] (!%p641_p9)  ;;  %s5502_s6 = sld [smem:[#allocation14_spill]] (!%p641_p9) }
  0x1c   : > { %644 = sbr.rel (%p641_p9) target bundleno = 3986 (0xf92), region = 112  ;;  %4684 = vset.pattern.permute.xlu1 (!%p641_p9), %v4749_v3  ;;  %4683 = vset.pattern.permute.xlu0 (!%p641_p9), %v4749_v3  ;;  %v4507_v11 = vpack.c.bf16 (!%p641_p9), %v796_v9, %v795_v8  ;;  %v798_v12 = vld [vmem:[%s5458_s13 + $0x18] sm:$0xff] (!%p641_p9)  ;;  %v3927_v16 = vld [vmem:[%s5458_s13 + $0x20] sm:$0xff] (!%p641_p9)  ;;  %v3928_v17 = vld [vmem:[%s5458_s13 + $0x28] sm:$0xff] (!%p641_p9)  ;;  %s5503_s7 = sld [smem:[#allocation16_spill]] (!%p641_p9)  ;;  %vm799_vm0 = vcmask (!%p641_p9), 261120  }
  0x1d   : > { %v4511_v15 = vpack.c.bf16 (!%p641_p9), %v798_v12, %v797_v10  ;;  %v4515_v20 = vpack.c.bf16 (!%p641_p9), %v3928_v17, %v3927_v16  ;;  %s5504_s8 = sld [smem:[#allocation20_spill]] (!%p641_p9)  ;;  %s5505_s29 = sld [smem:[#allocation18_spill]] (!%p641_p9)  ;;  %v3212_v31 = vld [vmem:[%s5455_s10] sm:$0xff] (!%p641_p9)  ;;  %v3214_v33 = vld [vmem:[%s5455_s10 + $0x10] sm:$0xff] (!%p641_p9)  ;;  %v3213_v34 = vld [vmem:[%s5455_s10 + $0x8] sm:$0xff] (!%p641_p9)  ;;  %vm1355_vm1 = vcmask (!%p641_p9), 130048  }
  0x1e   : > { %4508 = vmatprep.subr.bf16.mxu0 (!%p641_p9), %v4507_v11  ;;  %v3840_v35 = vld [vmem:[#allocation2] sm:$0x1] (!%p641_p9)  ;;  %v3215_v36 = vld [vmem:[%s5455_s10 + $0x18] sm:$0xff] (!%p641_p9)  ;;  %p701_p10 = scmp.lt.s32.totalorder (!%p641_p9), %s4898_s12, 1  ;;  %s5506_s5 = sld [smem:[#allocation12_spill]] (!%p641_p9)  ;;  %v3929_v41 = vld [vmem:[%s5458_s13 + $0x30] sm:$0xff] (!%p641_p9) }
  0x1f   : > { %4510 = vmatpush3.bf16.msra.mxu0 (!%p641_p9), %v4507_v11  ;;  %v3930_v42 = vld [vmem:[%s5458_s13 + $0x38] sm:$0xff] (!%p641_p9)  ;;  %v1039_v57 = vld [vmem:[%s5462_s17] sm:$0xff] (!%p641_p9)  ;;  %v1040_v58 = vld [vmem:[%s5462_s17 + $0x8] sm:$0xff] (!%p641_p9)  ;;  %s5507_s26 = sld [smem:[#allocation15_spill]] (!%p641_p9)  ;;  %vm4751_vm2 = vmmov (!%p641_p9), 0   ;;  %vm1797_vm3 = vcmask (!%p641_p9), 64512  }
  0x20   : > { %4512 = vmatprep.subr.bf16.mxu0 (!%p641_p9), %v4511_v15  ;;  %v4519_v47 = vpack.c.bf16 (!%p641_p9), %v3930_v42, %v3929_v41  ;;  %v4523_v59 = vpack.c.bf16 (!%p641_p9), %v1040_v58, %v1039_v57  ;;  %v1041_v60 = vld [vmem:[%s5462_s17 + $0x10] sm:$0xff] (!%p641_p9)  ;;  %v1042_v61 = vld [vmem:[%s5462_s17 + $0x18] sm:$0xff] (!%p641_p9)  ;;  %v3939_v63 = vld [vmem:[%s5462_s17 + $0x20] sm:$0xff] (!%p641_p9)  ;;  %s5509_s30 = sld [smem:[#allocation19_spill]] (!%p641_p9)  ;;  %vm2248_vm4 = vcmask (!%p641_p9), 1043456   ;;  %vm2241_vm5 = vcmask (!%p641_p9), 31744  }
  0x21   : > { %v707_v1 = vld [vmem:[%s5501_s4 + $0x10] sm:$0xff] (!%p641_p9)  ;;  %v705_v2 = vld [vmem:[%s5501_s4] sm:$0xff] (!%p641_p9)  ;;  %v708_v4 = vld [vmem:[%s5501_s4 + $0x18] sm:$0xff] (!%p641_p9)  ;;  %v4527_v62 = vpack.c.bf16 (!%p641_p9), %v1042_v61, %v1041_v60  ;;  %s699_s27 = sand.u32 (!%p641_p9), 1, %s4739_s25   ;;  %s4042_s1 = sshll.u32 (!%p641_p9), %s4898_s12, 4  ;;  %vm3851_vm6 = vcmask (!%p641_p9), 253952  }
  0x22   : > { %729 = vperm.xlu1 (!%p641_p9), %4684, %v707_v1   ;;  %719 = vperm.xlu0 (!%p641_p9), %4683, %v705_v2   ;;  %v706_v5 = vld [vmem:[%s5501_s4 + $0x8] sm:$0xff] (!%p641_p9)  ;;  %v713_v7 = vld [vmem:[%s5501_s4 + $0x40] sm:$0xff] (!%p641_p9)  ;;  %v716_v13 = vld [vmem:[%s5501_s4 + $0x58] sm:$0xff] (!%p641_p9)  ;;  %s5403_s2 = scalar_lea.hbm (!%p641_p9), %s5468_s23, %s4042_s1 }
  0x23   : > { %v714_v6 = vld [vmem:[%s5501_s4 + $0x48] sm:$0xff]  ;;  %v715_v14 = vld [vmem:[%s5501_s4 + $0x50] sm:$0xff]  ;;  %v709_v19 = vld [vmem:[%s5501_s4 + $0x20] sm:$0xff]  ;;  %4514 = vmatpush3.bf16.msra.mxu0 %v4511_v15  ;;  %s702_s24 = scalar_select %p701_p10, %s4898_s12, 1  ;;  %4524 = vmatprep.subr.bf16.mxu1 %v4523_v59 }
  0x24   : > { %v710_v18 = vld [vmem:[%s5501_s4 + $0x28] sm:$0xff]  ;;  %v1007_v21 = vld [vmem:[%s5502_s6] sm:$0xff]  ;;  %v711_v22 = vld [vmem:[%s5501_s4 + $0x30] sm:$0xff]  ;;  %4516 = vmatprep.subr.bf16.mxu0 %v4515_v20  ;;  %4526 = vmatpush3.bf16.msra.mxu1 %v4523_v59 }
  0x25   : > { %v1008_v23 = vld [vmem:[%s5502_s6 + $0x8] sm:$0xff]  ;;  %v712_v24 = vld [vmem:[%s5501_s4 + $0x38] sm:$0xff]  ;;  %v1009_v26 = vld [vmem:[%s5502_s6 + $0x10] sm:$0xff]  ;;  %s703_s3 = scalar_lea.vmem %s5506_s5, %s702_s24  ;;  %4528 = vmatprep.subr.bf16.mxu1 %v4527_v62  ;;  %s700_s5 = scalar_lea.vmem [#allocation3], %s699_s27 }
  0x26   : > { %734 = vperm.xlu1 %4684, %v708_v4   ;;  %724 = vperm.xlu0 %4683, %v706_v5   ;;  %v1010_v25 = vld [vmem:[%s5502_s6 + $0x18] sm:$0xff]  ;;  %v1526_v27 = vld [vmem:[%s5503_s7 + $0x8] sm:$0xff]  ;;  %v1525_v28 = vld [vmem:[%s5503_s7] sm:$0xff]  ;;  %s3854_s24 = scalar_lea.sflag [#allocation4], %s699_s27  ;;  %s4753_s6 = smov [#allocation3]  }
  0x27   : > { %v2588_v29 = vld [vmem:[%s5504_s8] sm:$0xff]  ;;  %v2589_v32 = vld [vmem:[%s5504_s8 + $0x8] sm:$0xff]  ;;  %v3956_v57 = vld [vmem:[%s5459_s14 + $0x18] sm:$0xff]  ;;  %s4689_s7 = sshll.u32 %s4753_s6, 4  ;;  %s4690_s7 = int_to_ptr.vmem [resolvable:$false] %s4689_s7 }
  0x28   : > { %v1948_v30 = vld [vmem:[%s5505_s29] sm:$0xff]  ;;  %4530 = vmatpush3.bf16.msra.mxu1 %v4527_v62  ;;  %v3940_v0 = vld [vmem:[%s5462_s17 + $0x28] sm:$0xff]  ;;  %s5508_s29 = sld [smem:[#allocation17_spill]]  ;;  %s4691_s8 = scalar_lea.vmem %s4690_s7, 32 }
  0x29   : > { %v3922_v37 = vld [vmem:[%s703_s3] ss:$0 sm:$0xff]  ;;  %v4531_v1 = vpack.c.bf16 %v3940_v0, %v3939_v63  ;;  %v1542_v0 = vld [vmem:[%s5463_s18 + $0x8] sm:$0xff]  ;;  %s3866_s3 = sshll.u32 %s700_s5, 4  ;;  %s5405_s3 = int_to_ptr.vmem [resolvable:$true] %s3866_s3 }
  0x2a   : > { %764 = vperm.xlu1 %4684, %v714_v6   ;;  %759 = vperm.xlu0 %4683, %v713_v7   ;;  %v1541_v63 = vld [vmem:[%s5463_s18] sm:$0xff]  ;;  %s4685_s12 = scalar_lea.vmem %s5405_s3, 16  ;;  %p4692_p0 = scmp.lt.s32.totalorder %s5405_s3, %s4690_s7 }
  0x2b   : > { %4532 = vmatprep.subr.bf16.mxu1 %v4531_v1  ;;  %p4686_p11 = scmp.ne.s32.totalorder %s5405_s3, %s4685_s12  ;;  %p4693_p1 = scmp.lt.s32.totalorder %s4691_s8, %s4685_s12 }
  0x2d   : > { %p4687_p12 = pnand %p4686_p11, %p4915_p5  ;;  %p4694_p2 = por %p4693_p1, %p4692_p0 }
  0x2e   : > { %774 = vperm.xlu1 %4684, %v716_v13   ;;  %769 = vperm.xlu0 %4683, %v715_v14  }
  0x2f   : > { %p4688_p13 = pneg %p4687_p12 }
  0x31   : > { %p4695_p3 = pnand %p4694_p2, %p4688_p13 }
  0x32   : > { %744 = vperm.xlu1 %4684, %v710_v18   ;;  %739 = vperm.xlu0 %4683, %v709_v19   ;;  %v3941_v19 = vld [vmem:[%s5462_s17 + $0x30] sm:$0xff] }
  0x36   : > { %1013 = vperm.xlu1 %4684, %v1007_v21   ;;  %749 = vperm.xlu0 %4683, %v711_v22  }
  0x3a   : > { %1018 = vperm.xlu1 %4684, %v1008_v23   ;;  %754 = vperm.xlu0 %4683, %v712_v24  }
  0x3e   : > { %1028 = vperm.xlu1 %4684, %v1010_v25   ;;  %1023 = vperm.xlu0 %4683, %v1009_v26  }
  0x42   : > { %1534 = vperm.xlu1 %4684, %v1526_v27   ;;  %1529 = vperm.xlu0 %4683, %v1525_v28  }
  0x46   : > { %2592 = vperm.xlu1 %4684, %v2588_v29   ;;  %1951 = vperm.xlu0 %4683, %v1948_v30  }
  0x4a   : > { %3218 = vperm.xlu1 %4684, %v3212_v31   ;;  %2597 = vperm.xlu0 %4683, %v2589_v32  }
  0x4e   : > { %3228 = vperm.xlu1 %4684, %v3214_v33   ;;  %3223 = vperm.xlu0 %4683, %v3213_v34   ;;  %v1234_v33 = vld [vmem:[%s5507_s26] sm:$0xff] }
  0x52   : > { %3843 = vperm.xlu1 %4684, %v3840_v35   ;;  %3233 = vperm.xlu0 %4683, %v3215_v36  }
  0xa1   : > { %v730_v38 = vpop.permute.xlu1 %729  ;;  %v720_v39 = vpop.permute.xlu0 %719 }
  0xa2   : > { %v783_v40 = vmul.f32 %v3922_v37, %v720_v39  ;;  %v785_v43 = vmul.f32 %v3922_v37, %v730_v38 }
  0xa4   : > { %4215 = vmatprep.mubr.msk.f32.mxu0 %vm799_vm0, %v783_v40 }
  0xa5   : > { %v735_v44 = vpop.permute.xlu1 %734  ;;  %v725_v45 = vpop.permute.xlu0 %724 }
  0xa6   : > { %v784_v46 = vmul.f32 %v3922_v37, %v725_v45  ;;  %v786_v50 = vmul.f32 %v3922_v37, %v735_v44 }
  0xa8   : > { %4216 = vmatmul.mubr.msk.f32.vlgmr.msra.gmra.mrb[0].mxu0 %vm799_vm0, %v784_v46  ;;  %v1353_v46 = vld [vmem:[%s5459_s14] sm:$0xff] }
  0xa9   : > { %v765_v48 = vpop.permute.xlu1 %764  ;;  %v760_v49 = vpop.permute.xlu0 %759  ;;  %4218 = vmatprep.mubr.msk.f32.mxu0 %vm799_vm0, %v785_v43  ;;  %4518 = vmatpush3.bf16.msra.mxu0 %v4515_v20  ;;  %v3942_v20 = vld [vmem:[%s5462_s17 + $0x38] sm:$0xff] }
  0xaa   : > { %v791_v51 = vmul.f32 %v3922_v37, %v760_v49  ;;  %4520 = vmatprep.subr.bf16.mxu0 %v4519_v47  ;;  %v792_v53 = vmul.f32 %v3922_v37, %v765_v48  ;;  %v4535_v29 = vpack.c.bf16 %v3942_v20, %v3941_v19 }
  0xac   : > { %4219 = vmatmul.mubr.msk.f32.gmra.mrb[2].mxu0 %vm799_vm0, %v786_v50 }
  0xad   : > { %v770_v52 = vpop.permute.xlu0 %769  ;;  %4522 = vmatpush3.bf16.msra.mxu0 %v4519_v47  ;;  %4229 = vmatprep.mubr.msk.f32.mxu0 %vm799_vm0, %v791_v51  ;;  %v775_v55 = vpop.permute.xlu1 %774  ;;  %v1354_v47 = vld [vmem:[%s5459_s14 + $0x8] sm:$0xff] }
  0xae   : > { %v793_v54 = vmul.f32 %v3922_v37, %v770_v52  ;;  %v794_v56 = vmul.f32 %v3922_v37, %v775_v55  ;;  %v5079_v50 = vpack.c.bf16 %v1354_v47, %v1353_v46  ;;  %v1235_v51 = vld [vmem:[%s5507_s26 + $0x8] sm:$0xff]  ;;  %v1236_v52 = vld [vmem:[%s5507_s26 + $0x10] sm:$0xff] }
  0xaf   : > { %v1239_v55 = vld [vmem:[%s5507_s26 + $0x28] sm:$0xff] }
  0xb0   : > { %4230 = vmatmul.mubr.msk.f32.vlgmr.msra.gmra.mrb[0].mxu0 %vm799_vm0, %v792_v53  ;;  %v1237_v53 = vld [vmem:[%s5507_s26 + $0x18] sm:$0xff] }
  0xb1   : > { %4232 = vmatprep.mubr.msk.f32.mxu0 %vm799_vm0, %v793_v54  ;;  %v745_v2 = vpop.permute.xlu1 %744  ;;  %v740_v3 = vpop.permute.xlu0 %739  ;;  %v1238_v54 = vld [vmem:[%s5507_s26 + $0x20] sm:$0xff] }
  0xb2   : > { %v788_v6 = vmul.f32 %v3922_v37, %v745_v2  ;;  %v787_v8 = vmul.f32 %v3922_v37, %v740_v3  ;;  %v3961_v2 = vld [vmem:[%s5463_s18 + $0x10] sm:$0xff]  ;;  %v3962_v3 = vld [vmem:[%s5463_s18 + $0x18] sm:$0xff] }
  0xb4   : > { %4233 = vmatmul.mubr.msk.f32.gmra.mrb[2].mxu0 %vm799_vm0, %v794_v56  ;;  %v3955_v56 = vld [vmem:[%s5459_s14 + $0x10] sm:$0xff] }
  0xb5   : > { %v1014_v4 = vpop.permute.xlu1 %1013  ;;  %v750_v5 = vpop.permute.xlu0 %749  ;;  %4271 = vmatprep.mubr.msk.f32.mxu0 %vm799_vm0, %v1234_v33  ;;  %v5109_v58 = vpack.c.bf16 %v3956_v57, %v3955_v56  ;;  %v1956_v33 = vld [vmem:[%s5464_s19] sm:$0xff]  ;;  %v2109_v56 = vld [vmem:[%s5509_s30 + $0x30] sm:$0xff]  ;;  %v2110_v57 = vld [vmem:[%s5509_s30 + $0x38] sm:$0xff] }
  0xb6   : > { %v789_v16 = vmul.f32 %v3922_v37, %v750_v5 }
  0xb9   : > { %v1019_v7 = vpop.permute.xlu1 %1018  ;;  %v755_v9 = vpop.permute.xlu0 %754 }
  0xba   : > { %v790_v14 = vmul.f32 %v3922_v37, %v755_v9 }
  0xbd   : > { %v1029_v23 = vpop.permute.xlu1 %1028  ;;  %v1024_v26 = vpop.permute.xlu0 %1023 }
  0xc1   : > { %v1535_v5 = vpop.permute.xlu1 %1534 }
 0x183   : > { %v4231_v10 = vpop.f32.mrb[0].mxu0 }
 0x184   : > { %v4606_v11 = vadd.f32 %v4231_v10, %v788_v6  ;;  %v984_v12 = vpop.f32.mrb[1].mxu0 }
 0x185   : > { %v4607_v13 = vadd.f32 %v984_v12, %v787_v8 }
 0x186   : > { %v1032_v15 = vadd.f32 %v4606_v11, %v1019_v7  ;;  %v1530_v7 = vpop.permute.xlu0 %1529 }
 0x187   : > { %v4234_v17 = vpop.f32.mrb[2].mxu0  ;;  %v1031_v18 = vadd.f32 %v4607_v13, %v1014_v4  ;;  %v4559_v4 = vpack.c.bf16 %v3962_v3, %v3961_v2  ;;  %v4750_v13 = vmov 0.0|0.0   ;;  %v2417_v2 = vld [vmem:[%s5465_s20] sm:$0xf] }
 0x188   : > { %v4608_v21 = vadd.f32 %v4234_v17, %v790_v14  ;;  %v994_v22 = vpop.f32.mrb[3].mxu0  ;;  %v1036_v27 = vmax.f32 %v1032_v15, 0.0  ;;  %v4752_v14 = vmov 0.0  }
 0x189   : > { %v4609_v24 = vadd.f32 %v994_v22, %v789_v16  ;;  %v1035_v25 = vmax.f32 %v1031_v18, 0.0  ;;  %v1704_v22 = vld [vmem:[%s5508_s29] sm:$0xff] }
 0x18a   : > { %v1034_v28 = vadd.f32 %v4608_v21, %v1029_v23  ;;  %v1705_v23 = vld [vmem:[%s5508_s29 + $0x8] sm:$0xff] }
 0x18b   : > { %v1033_v30 = vadd.f32 %v4609_v24, %v1024_v26  ;;  %4243 = vmatprep.mubr.msk.f32.mxu1 %vm799_vm0, %v1035_v25  ;;  %v1706_v24 = vld [vmem:[%s5508_s29 + $0x10] sm:$0xff]  ;;  %v5167_v26 = vld [vmem:[%s5460_s15 + $0x8] sm:$0xff] }
 0x18c   : > { %4244 = vmatmul.mubr.msk.f32.vlgmr.msra.gmra.mrb[0].mxu1 %vm799_vm0, %v1036_v27  ;;  %v1038_v32 = vmax.f32 %v1034_v28, 0.0 }
 0x18d   : > { %v1037_v31 = vmax.f32 %v1033_v30, 0.0  ;;  %4534 = vmatpush3.bf16.msra.mxu1 %v4531_v1  ;;  %v4555_v1 = vpack.c.bf16 %v1542_v0, %v1541_v63 }
 0x18e   : > { %4536 = vmatprep.subr.bf16.mxu1 %v4535_v29 }
 0x18f   : > { %4246 = vmatprep.mubr.msk.f32.mxu1 %vm799_vm0, %v1037_v31 }
 0x190   : > { %4247 = vmatmul.mubr.msk.f32.gmra.mrb[2].mxu1 %vm799_vm0, %v1038_v32 }
 0x191   : > { %4538 = vmatpush3.bf16.msra.mxu1 %v4535_v29  ;;  %4257 = vmatprep.mubr.msk.f32.mxu1 %vm799_vm0, %v1035_v25  ;;  %v5161_v25 = vld [vmem:[%s5460_s15] sm:$0xff] }
 0x192   : > { %4556 = vmatprep.subr.bf16.mxu1 %v4555_v1 }
 0x194   : > { %4258 = vmatmul.mubr.msk.f32.vlgmr.msra.gmra.mrb[4].mxu1 %vm799_vm0, %v1036_v27 }
 0x195   : > { %4260 = vmatprep.mubr.msk.f32.mxu1 %vm799_vm0, %v1037_v31  ;;  %4558 = vmatpush3.bf16.msra.mxu1 %v4555_v1  ;;  %v3989_v1 = vld [vmem:[%s5465_s20 + $0x4] sm:$0xf] }
 0x196   : > { %4560 = vmatprep.subr.bf16.mxu1 %v4559_v4 }
 0x198   : > { %4261 = vmatmul.mubr.msk.f32.gmra.mrb[6].mxu1 %vm799_vm0, %v1038_v32 }
 0x25f   : > { %v4245_v34 = vpop.f32.mrb[0].mxu1 }
 0x260   : > { %v1121_v35 = vpop.f32.mrb[1].mxu1 }
 0x263   : > { %v4248_v36 = vpop.f32.mrb[2].mxu1 }
 0x264   : > { %v1131_v37 = vpop.f32.mrb[3].mxu1 }
 0x267   : > { %v4259_v38 = vpop.f32.mrb[4].mxu1 }
 0x268   : > { %v1231_v39 = vmax.f32 %v4245_v34, %v4259_v38  ;;  %v1211_v40 = vpop.f32.mrb[5].mxu1  ;;  %v3972_v34 = vld [vmem:[%s5464_s19 + $0x8] sm:$0xff] }
 0x269   : > { %v1230_v41 = vmax.f32 %v1121_v35, %v1211_v40 }
 0x26b   : > { %v4539_v42 = vpack.c.bf16 %v1231_v39, %v1230_v41  ;;  %v4262_v43 = vpop.f32.mrb[6].mxu1  ;;  %v1952_v41 = vpop.permute.xlu0 %1951 }
 0x26c   : > { %v1233_v44 = vmax.f32 %v4248_v36, %v4262_v43  ;;  %v1221_v45 = vpop.f32.mrb[7].mxu1 }
 0x26d   : > { %v1232_v48 = vmax.f32 %v1131_v37, %v1221_v45  ;;  %4540 = vmatprep.subr.bf16.mxu0 %v4539_v42 }
 0x26e   : > { %4542 = vmatpush3.bf16.msra.mxu0 %v4539_v42 }
 0x26f   : > { %v4543_v49 = vpack.c.bf16 %v1233_v44, %v1232_v48  ;;  %v2103_v44 = vld [vmem:[%s5509_s30] sm:$0xff] }
 0x271   : > { %4544 = vmatprep.subr.bf16.mxu0 %v4543_v49 }
 0x272   : > { %4546 = vmatpush3.bf16.msra.mxu0 %v4543_v49 }
 0x273   : > { %4548 = vmatprep.subr.bf16.mxu0 %v5079_v50 }
 0x275   : > { %4272 = vmatmul.mubr.msk.f32.vlgmr.msra.gmra.mrb[4].mxu0 %vm799_vm0, %v1235_v51  ;;  %v2104_v51 = vld [vmem:[%s5509_s30 + $0x8] sm:$0xff] }
 0x276   : > { %4274 = vmatprep.mubr.msk.f32.mxu0 %vm799_vm0, %v1236_v52  ;;  %4550 = vmatpush3.bf16.msra.mxu0 %v5079_v50  ;;  %v2105_v52 = vld [vmem:[%s5509_s30 + $0x10] sm:$0xff] }
 0x277   : > { %4552 = vmatprep.subr.bf16.mxu0 %v5109_v58 }
 0x279   : > { %4275 = vmatmul.mubr.msk.f32.gmra.mrb[6].mxu0 %vm799_vm0, %v1237_v53  ;;  %v2106_v53 = vld [vmem:[%s5509_s30 + $0x18] sm:$0xff] }
 0x27a   : > { %4277 = vmatprep.mubr.msk.f32.mxu0 %vm799_vm0, %v1238_v54  ;;  %v2107_v54 = vld [vmem:[%s5509_s30 + $0x20] sm:$0xff] }
 0x27d   : > { %4278 = vmatmul.mubr.msk.f32.gmra.mrb[8].mxu0 %vm799_vm0, %v1239_v55  ;;  %v2108_v55 = vld [vmem:[%s5509_s30 + $0x28] sm:$0xff] }
 0x348   : > { %v4273_v59 = vpop.f32.mrb[4].mxu0 }
 0x349   : > { %v1324_v60 = vpop.f32.mrb[5].mxu0 }
 0x34a   : > { %4284 = vmatprep.mubr.msk.f32.mxu0 %vm1355_vm1, %v1324_v60  ;;  %v3985_v60 = vld [vmem:[%s5461_s16 + $0x4] sm:$0xf] }
 0x34b   : > { %4285 = vmatmul.mubr.msk.f32.vlgmr.msra.gmra.mrb[6].mxu0 %vm1355_vm1, %v4273_v59  ;;  %v2240_v59 = vld [vmem:[%s5461_s16] sm:$0xf] }
 0x34c   : > { %4554 = vmatpush3.bf16.msra.mxu0 %v5109_v58 }
 0x34d   : > { %4321 = vmatprep.subr.mxu0 %v4752_v14 }
 0x350   : > { %v4279_v61 = vpop.f32.mrb[8].mxu0 }
 0x351   : > { %v1344_v62 = vpop.f32.mrb[9].mxu0 }
 0x352   : > { %4291 = vmatprep.mubr.msk.f32.mxu0 %vm1355_vm1, %v1344_v62 }
 0x353   : > { %4292 = vmatmul.mubr.msk.f32.vlgmr.msra.gmra.mrb[6].mxu0 %vm1355_vm1, %v4279_v61 }
 0x354   : > { %4323 = vmatprep.mubr.msk.f32.mxu0 %vm4751_vm2, %v4752_v14  ;;  %4322 = vmatpush3.msra.mxu0 %v5161_v25 }
 0x355   : > { %4331 = vmatprep.subr.mxu0 %v4752_v14 }
 0x426   : > { %v4293_v6 = vpop.f32.mrb[6].mxu0 }
 0x427   : > { %v1538_v8 = vadd.f32 %v4293_v6, %v1535_v5  ;;  %v1514_v9 = vpop.f32.mrb[7].mxu0 }
 0x428   : > { %v1537_v10 = vadd.f32 %v1530_v7, %v1514_v9  ;;  %v2604_v7 = vld [vmem:[%s5454_s9] sm:$0xff] }
 0x429   : > { %v1540_v12 = vmax.f32 %v1538_v8, 0.0  ;;  %v2598_v8 = vpop.permute.xlu0 %2597 }
 0x42a   : > { %v1539_v11 = vmax.f32 %v1537_v10, 0.0  ;;  %v2593_v10 = vpop.permute.xlu1 %2592 }
 0x42c   : > { %4298 = vmatprep.mubr.msk.f32.mxu1 %vm1355_vm1, %v1539_v11 }
 0x42d   : > { %4299 = vmatmul.mubr.msk.f32.vlgmr.msra.gmra.mrb[8].mxu1 %vm1355_vm1, %v1540_v12 }
 0x42e   : > { %4562 = vmatpush3.bf16.msra.mxu1 %v4559_v4  ;;  %4305 = vmatprep.mubr.msk.f32.mxu1 %vm1355_vm1, %v1539_v11 }
 0x42f   : > { %4563 = vmatprep.subr.bf16.mxu1 %v4750_v13 }
 0x431   : > { %4306 = vmatmul.mubr.msk.f32.vlgmr.msra.gmra.mrb[10].mxu1 %vm1355_vm1, %v1540_v12 }
 0x432   : > { %4312 = vmatprep.mubr.msk.f32.mxu1 %vm4751_vm2, %v4752_v14 }
 0x500   : > { %v4300_v15 = vpop.f32.mrb[8].mxu1 }
 0x501   : > { %v1615_v16 = vpop.f32.mrb[9].mxu1 }
 0x504   : > { %v4307_v17 = vpop.f32.mrb[10].mxu1 }
 0x505   : > { %v1703_v18 = vmax.f32 %v4300_v15, %v4307_v17  ;;  %v1693_v19 = vpop.f32.mrb[11].mxu1 }
 0x506   : > { %v1702_v20 = vmax.f32 %v1615_v16, %v1693_v19  ;;  %v2605_v19 = vld [vmem:[%s5454_s9 + $0x8] sm:$0xff] }
 0x508   : > { %v4564_v21 = vpack.c.bf16 %v1703_v18, %v1702_v20  ;;  %v2606_v20 = vld [vmem:[%s5454_s9 + $0x10] sm:$0xff] }
 0x50a   : > { %4565 = vmatpush3.bf16.msra.mxu1 %v4564_v21  ;;  %v2607_v21 = vld [vmem:[%s5454_s9 + $0x18] sm:$0xff] }
 0x50b   : > { %4326 = vmatprep.subr.mxu1 %v4752_v14 }
 0x50d   : > { %4313 = vmatmul.mubr.msk.f32.vlgmr.msra.gmra.mrb[12].mxu1 %vm1355_vm1, %v1704_v22  ;;  %v2608_v22 = vld [vmem:[%s5454_s9 + $0x20] sm:$0xff] }
 0x50e   : > { %4315 = vmatprep.mubr.msk.f32.mxu1 %vm4751_vm2, %v4752_v14  ;;  %4327 = vmatpush3.msra.mxu1 %v5167_v26 }
 0x50f   : > { %4336 = vmatprep.subr.mxu1 %v4752_v14 }
 0x511   : > { %4316 = vmatmul.mubr.msk.f32.gmra.mrb[14].mxu1 %vm1355_vm1, %v1705_v23  ;;  %v2609_v23 = vld [vmem:[%s5454_s9 + $0x28] sm:$0xff] }
 0x512   : > { %4318 = vmatprep.mubr.msk.f32.mxu1 %vm4751_vm2, %v4752_v14 }
 0x515   : > { %4319 = vmatmul.mubr.msk.f32.gmra.mrb[16].mxu1 %vm1355_vm1, %v1706_v24  ;;  %v2610_v24 = vld [vmem:[%s5454_s9 + $0x30] sm:$0xff] }
 0x516   : > { %4328 = vmatprep.mubr.msk.f32.mxu1 %vm4751_vm2, %v4752_v14 }
 0x5e0   : > { %v1782_v27 = vpop.f32.mrb[12].mxu1 }
 0x5e1   : > { %v4314_v28 = vpop.f32.mrb[13].mxu1  ;;  %4324 = vmatmul.mubr.msk.f32.vlgmr.msra.gmra.mrb[10].mxu0 %vm1797_vm3, %v1782_v27  ;;  %v2612_v27 = vld [vmem:[%s5454_s9 + $0x40] sm:$0xff] }
 0x5e2   : > { %4333 = vmatprep.mubr.msk.f32.mxu0 %vm4751_vm2, %v4752_v14  ;;  %4332 = vmatpush3.msra.mxu0 %v1956_v33  ;;  %v2613_v28 = vld [vmem:[%s5454_s9 + $0x48] sm:$0xff]  ;;  %v2618_v33 = vld [vmem:[%s5454_s9 + $0x70] sm:$0xff] }
 0x5e4   : > { %v1787_v29 = vpop.f32.mrb[14].mxu1 }
 0x5e5   : > { %v4317_v30 = vpop.f32.mrb[15].mxu1 }
 0x5e6   : > { %v2615_v30 = vld [vmem:[%s5454_s9 + $0x58] sm:$0xff] }
 0x5e8   : > { %v1792_v31 = vpop.f32.mrb[16].mxu1 }
 0x5e9   : > { %v4320_v32 = vpop.f32.mrb[17].mxu1  ;;  %4329 = vmatmul.mubr.msk.f32.vlgmr.msra.gmra.mrb[18].mxu1 %vm1797_vm3, %v1792_v31  ;;  %v2616_v31 = vld [vmem:[%s5454_s9 + $0x60] sm:$0xff] }
 0x5ea   : > { %4338 = vmatprep.mubr.msk.f32.mxu1 %vm4751_vm2, %v4752_v14  ;;  %4337 = vmatpush3.msra.mxu1 %v3972_v34  ;;  %v2617_v32 = vld [vmem:[%s5454_s9 + $0x68] sm:$0xff]  ;;  %v2619_v34 = vld [vmem:[%s5454_s9 + $0x78] sm:$0xff] }
 0x5eb   : > { %4365 = vmatprep.subr.msk.mxu1 %vm2248_vm4, %v3989_v1 }
 0x6b4   : > { %v1867_v35 = vpop.f32.mrb[10].mxu0 }
 0x6b5   : > { %v1871_v36 = vadd.f32 %v1867_v35, %v1787_v29  ;;  %v4325_v37 = vpop.f32.mrb[11].mxu0  ;;  %v2614_v29 = vld [vmem:[%s5454_s9 + $0x50] sm:$0xff] }
 0x6bc   : > { %v1943_v38 = vpop.f32.mrb[18].mxu1 }
 0x6bd   : > { %v1947_v39 = vadd.f32 %v1943_v38, %v1871_v36  ;;  %v4330_v40 = vpop.f32.mrb[19].mxu1 }
 0x6bf   : > { %v1954_v42 = vadd.f32 %v1952_v41, %v1947_v39 }
 0x6c1   : > { %v1955_v43 = vmax.f32 %v1954_v42, 0.0 }
 0x6c3   : > { %4334 = vmatmul.mubr.msk.f32.vlgmr.msra.gmra.mrb[12].mxu0 %vm1797_vm3, %v1955_v43  ;;  %4339 = vmatmul.mubr.msk.f32.vlgmr.msra.gmra.mrb[20].mxu1 %vm1797_vm3, %v1955_v43  ;;  %v3015_v43 = vld [vmem:[%s5466_s21] sm:$0xff] }
 0x6c4   : > { %4343 = vmatprep.mubr.msk.f32.mxu0 %vm1797_vm3, %v2103_v44  ;;  %4366 = vmatpush3.msk.msra.mxu1 %vm2248_vm4, %v3989_v1 }
 0x6c5   : > { %4370 = vmatprep.subr.msk.mxu1 %vm2248_vm4, %v2417_v2 }
 0x796   : > { %v2026_v45 = vpop.f32.mrb[12].mxu0  ;;  %v2098_v46 = vpop.f32.mrb[20].mxu1 }
 0x797   : > { %v2102_v47 = vmax.f32 %v2026_v45, %v2098_v46  ;;  %v4335_v48 = vpop.f32.mrb[13].mxu0  ;;  %v4340_v49 = vpop.f32.mrb[21].mxu1 }
 0x799   : > { %4341 = vmatprep.subr.mxu0 %v2102_v47 }
 0x79a   : > { %4342 = vmatpush3.msra.mxu0 %v2102_v47 }
 0x79b   : > { %4344 = vmatmul.mubr.msk.f32.vlgmr.msra.gmra.mrb[14].mxu0 %vm1797_vm3, %v2104_v51  ;;  %4355 = vmatprep.subr.msk.mxu0 %vm2248_vm4, %v2240_v59 }
 0x79c   : > { %4346 = vmatprep.mubr.msk.f32.mxu0 %vm1797_vm3, %v2105_v52  ;;  %4356 = vmatpush3.msk.msra.mxu0 %vm2248_vm4, %v2240_v59  ;;  %v3224_v52 = vpop.permute.xlu0 %3223 }
 0x79d   : > { %4360 = vmatprep.subr.msk.mxu0 %vm2248_vm4, %v3985_v60 }
 0x79f   : > { %4347 = vmatmul.mubr.msk.f32.gmra.mrb[16].mxu0 %vm1797_vm3, %v2106_v53  ;;  %v3219_v53 = vpop.permute.xlu1 %3218 }
 0x7a0   : > { %4349 = vmatprep.mubr.msk.f32.mxu0 %vm1797_vm3, %v2107_v54 }
 0x7a3   : > { %4350 = vmatmul.mubr.msk.f32.gmra.mrb[18].mxu0 %vm1797_vm3, %v2108_v55 }
 0x7a4   : > { %4352 = vmatprep.mubr.msk.f32.mxu0 %vm1797_vm3, %v2109_v56 }
 0x7a7   : > { %4353 = vmatmul.mubr.msk.f32.gmra.mrb[20].mxu0 %vm1797_vm3, %v2110_v57 }
 0x86e   : > { %v4345_v61 = vpop.f32.mrb[14].mxu0 }
 0x86f   : > { %v2201_v62 = vpop.f32.mrb[15].mxu0 }
 0x87a   : > { %v4354_v63 = vpop.f32.mrb[20].mxu0 }
 0x87b   : > { %v2231_v0 = vpop.f32.mrb[21].mxu0 }
 0x87c   : > { %4357 = vmatprep.mubr.msk.f32.mxu0 %vm2241_vm5, %v2231_v0 }
 0x87d   : > { %4358 = vmatmul.mubr.msk.f32.vlgmr.msra.gmra.mrb[16].mxu0 %vm2241_vm5, %v4354_v63  ;;  %v3229_v63 = vpop.permute.xlu1 %3228 }
 0x87e   : > { %4362 = vmatprep.mubr.msk.f32.mxu0 %vm2241_vm5, %v2201_v62  ;;  %4361 = vmatpush3.msk.msra.mxu0 %vm2248_vm4, %v3985_v60  ;;  %v3234_v60 = vpop.permute.xlu0 %3233 }
 0x881   : > { %4363 = vmatmul.mubr.msk.f32.vlgmr.msra.gmra.mrb[18].mxu0 %vm2241_vm5, %v4345_v61 }
 0x950   : > { %v4359_v3 = vpop.f32.mrb[16].mxu0 }
 0x951   : > { %v2318_v4 = vpop.f32.mrb[17].mxu0 }
 0x954   : > { %v4364_v5 = vpop.f32.mrb[18].mxu0 }
 0x955   : > { %v2406_v6 = vpop.f32.mrb[19].mxu0 }
 0x956   : > { %4367 = vmatprep.mubr.msk.f32.mxu1 %vm2241_vm5, %v2406_v6 }
 0x957   : > { %4368 = vmatmul.mubr.msk.f32.vlgmr.msra.gmra.mrb[22].mxu1 %vm2241_vm5, %v4364_v5 }
 0x958   : > { %4372 = vmatprep.mubr.msk.f32.mxu1 %vm2241_vm5, %v2318_v4  ;;  %4371 = vmatpush3.msk.msra.mxu1 %vm2248_vm4, %v2417_v2 }
 0x95f   : > { %4373 = vmatmul.mubr.msk.f32.vlgmr.msra.gmra.mrb[22].mxu1 %vm2241_vm5, %v4359_v3 }
 0x960   : > { %4379 = vmatprep.mubr.msk.f32.mxu1 %vm1355_vm1, %v2604_v7  ;;  %v3244_v7 = vld [vmem:[%s5456_s11] sm:$0x1] }
 0xa32   : > { %v4374_v9 = vpop.f32.mrb[22].mxu1 }
 0xa33   : > { %v2601_v11 = vadd.f32 %v4374_v9, %v2598_v8  ;;  %v2579_v12 = vpop.f32.mrb[23].mxu1  ;;  %v4032_v8 = vld [vmem:[%s5456_s11 + $0x3] sm:$0x1] }
 0xa34   : > { %v2600_v15 = vadd.f32 %v2593_v10, %v2579_v12 }
 0xa35   : > { %v2603_v16 = vmax.f32 %v2601_v11, 0.0 }
 0xa36   : > { %v2602_v17 = vmax.f32 %v2600_v15, 0.0  ;;  %v4038_v15 = vld [vmem:[%s5467_s22 + $0x10] sm:$0xff] }
 0xa38   : > { %v4566_v18 = vpack.c.bf16 %v2603_v16, %v2602_v17  ;;  %v4039_v16 = vld [vmem:[%s5467_s22 + $0x18] sm:$0xff]  ;;  %v4030_v17 = vld [vmem:[%s5456_s11 + $0x1] sm:$0x1] }
 0xa3a   : > { %4567 = vmatprep.subr.bf16.mxu1 %v4566_v18 }
 0xa3b   : > { %4569 = vmatpush3.bf16.msra.mxu1 %v4566_v18  ;;  %v4601_v18 = vpack.c.bf16 %v4039_v16, %v4038_v15 }
 0xa3c   : > { %4403 = vmatprep.subr.mxu1 %v5161_v25 }
 0xa3e   : > { %4380 = vmatmul.mubr.msk.f32.vlgmr.msra.gmra.mrb[24].mxu1 %vm1355_vm1, %v2605_v19  ;;  %v3689_v19 = vld [vmem:[%s5467_s22] sm:$0xff] }
 0xa3f   : > { %4382 = vmatprep.mubr.msk.f32.mxu1 %vm1355_vm1, %v2606_v20  ;;  %4404 = vmatpush3.msra.mxu1 %v5161_v25  ;;  %v2611_v25 = vld [vmem:[%s5454_s9 + $0x38] sm:$0xff]  ;;  %v3690_v20 = vld [vmem:[%s5467_s22 + $0x8] sm:$0xff] }
 0xa40   : > { %4411 = vmatprep.subr.mxu1 %v5167_v26 }
 0xa42   : > { %4383 = vmatmul.mubr.msk.f32.gmra.mrb[26].mxu1 %vm1355_vm1, %v2607_v21  ;;  %v4604_v21 = vpack.c.bf16 %v3690_v20, %v3689_v19 }
 0xa43   : > { %4385 = vmatprep.mubr.msk.f32.mxu1 %vm1355_vm1, %v2608_v22 }
 0xa46   : > { %4386 = vmatmul.mubr.msk.f32.gmra.mrb[28].mxu1 %vm1355_vm1, %v2609_v23 }
 0xa47   : > { %4388 = vmatprep.mubr.msk.f32.mxu1 %vm1355_vm1, %v2610_v24 }
 0xa4a   : > { %4389 = vmatmul.mubr.msk.f32.gmra.mrb[30].mxu1 %vm1355_vm1, %v2611_v25  ;;  %v3846_v25 = vlaneseq }
 0xa4b   : > { %4391 = vmatprep.mubr.msk.f32.mxu1 %vm1355_vm1, %v2612_v27 }
 0xa4e   : > { %4392 = vmatmul.mubr.msk.f32.gmra.mrb[32].mxu1 %vm1355_vm1, %v2613_v28  ;;  %v3847_v28 = vshrl.u32 %v3846_v25, 7 }
 0xa4f   : > { %4394 = vmatprep.mubr.msk.f32.mxu1 %vm1355_vm1, %v2614_v29 }
 0xa52   : > { %4395 = vmatmul.mubr.msk.f32.gmra.mrb[34].mxu1 %vm1355_vm1, %v2615_v30  ;;  %v3848_v30 = vsub.s32 0, %v3847_v28 }
 0xa53   : > { %4397 = vmatprep.mubr.msk.f32.mxu1 %vm1355_vm1, %v2616_v31  ;;  %v3844_v31 = vpop.permute.xlu1 %3843 }
 0xa56   : > { %4398 = vmatmul.mubr.msk.f32.gmra.mrb[36].mxu1 %vm1355_vm1, %v2617_v32 }
 0xa57   : > { %4400 = vmatprep.mubr.msk.f32.mxu1 %vm1355_vm1, %v2618_v33  ;;  %v3849_v33 = vrot.slane %v3844_v31, %v3848_v30 }
 0xa5a   : > { %4401 = vmatmul.mubr.msk.f32.gmra.mrb[38].mxu1 %vm1355_vm1, %v2619_v34 }
 0xb11   : > { %v4381_v35 = vpop.f32.mrb[24].mxu1 }
 0xb12   : > { %v2734_v36 = vpop.f32.mrb[25].mxu1 }
 0xb15   : > { %v4384_v37 = vpop.f32.mrb[26].mxu1 }
 0xb16   : > { %v2744_v38 = vpop.f32.mrb[27].mxu1 }
 0xb29   : > { %v4399_v39 = vpop.f32.mrb[36].mxu1 }
 0xb2a   : > { %v2794_v40 = vpop.f32.mrb[37].mxu1 }
 0xb2b   : > { %4405 = vmatprep.mubr.msk.f32.mxu1 %vm1797_vm3, %v2794_v40 }
 0xb2c   : > { %4406 = vmatmul.mubr.msk.f32.vlgmr.msra.gmra.mrb[28].mxu1 %vm1797_vm3, %v4399_v39 }
 0xb2d   : > { %v4402_v41 = vpop.f32.mrb[38].mxu1  ;;  %4412 = vmatpush3.msra.mxu1 %v5167_v26  ;;  %v4020_v26 = vld [vmem:[%s5466_s21 + $0x8] sm:$0xff] }
 0xb2e   : > { %v2804_v42 = vpop.f32.mrb[39].mxu1  ;;  %4591 = vmatprep.subr.bf16.mxu1 %v4750_v13  ;;  %4419 = vmatprep.subr.mxu0 %v4020_v26 }
 0xb2f   : > { %4408 = vmatprep.mubr.msk.f32.mxu1 %vm1797_vm3, %v2804_v42  ;;  %4420 = vmatpush3.msra.mxu0 %v4020_v26 }
 0xb30   : > { %4409 = vmatmul.mubr.msk.f32.gmra.mrb[30].mxu1 %vm1797_vm3, %v4402_v41  ;;  %4427 = vmatprep.subr.mxu0 %v3015_v43 }
 0xb31   : > { %4413 = vmatprep.mubr.msk.f32.mxu1 %vm1797_vm3, %v2734_v36 }
 0xb34   : > { %4414 = vmatmul.mubr.msk.f32.vlgmr.msra.gmra.mrb[32].mxu1 %vm1797_vm3, %v4381_v35 }
 0xb35   : > { %4416 = vmatprep.mubr.msk.f32.mxu1 %vm1797_vm3, %v2744_v38  ;;  %4593 = vmatpush3.bf16.msra.mxu1 %v5109_v58 }
 0xb36   : > { %4594 = vmatprep.subr.bf16.mxu1 %v4750_v13 }
 0xb38   : > { %4417 = vmatmul.mubr.msk.f32.gmra.mrb[34].mxu1 %vm1797_vm3, %v4384_v37 }
 0xb39   : > { %4479 = vmatprep.mubr.msk.f32.mxu1 %vm4751_vm2, %v4752_v14 }
 0xbff   : > { %v4407_v44 = vpop.f32.mrb[28].mxu1 }
 0xc00   : > { %v2891_v58 = vpop.f32.mrb[29].mxu1 }
 0xc03   : > { %v4410_v45 = vpop.f32.mrb[30].mxu1 }
 0xc04   : > { %v2901_v46 = vpop.f32.mrb[31].mxu1 }
 0xc07   : > { %v4415_v47 = vpop.f32.mrb[32].mxu1 }
 0xc08   : > { %v2992_v48 = vpop.f32.mrb[33].mxu1 }
 0xc09   : > { %4421 = vmatprep.mubr.msk.f32.mxu0 %vm1797_vm3, %v2992_v48 }
 0xc0a   : > { %4422 = vmatmul.mubr.msk.f32.vlgmr.msra.gmra.mrb[22].mxu0 %vm1797_vm3, %v4415_v47 }
 0xc0b   : > { %v4418_v49 = vpop.f32.mrb[34].mxu1  ;;  %4428 = vmatpush3.msra.mxu0 %v3015_v43 }
 0xc0c   : > { %v3002_v51 = vpop.f32.mrb[35].mxu1  ;;  %4570 = vmatprep.subr.bf16.mxu0 %v4750_v13 }
 0xc0d   : > { %4424 = vmatprep.mubr.msk.f32.mxu0 %vm1797_vm3, %v3002_v51 }
 0xc0e   : > { %4425 = vmatmul.mubr.msk.f32.gmra.mrb[24].mxu0 %vm1797_vm3, %v4418_v49 }
 0xc0f   : > { %4429 = vmatprep.mubr.msk.f32.mxu0 %vm1797_vm3, %v2891_v58 }
 0xc12   : > { %4430 = vmatmul.mubr.msk.f32.vlgmr.msra.gmra.mrb[22].mxu0 %vm1797_vm3, %v4407_v44 }
 0xc13   : > { %4432 = vmatprep.mubr.msk.f32.mxu0 %vm1797_vm3, %v2901_v46 }
 0xc16   : > { %4433 = vmatmul.mubr.msk.f32.gmra.mrb[24].mxu0 %vm1797_vm3, %v4410_v45 }
 0xc17   : > { %4443 = vmatprep.mubr.msk.f32.mxu0 %vm4751_vm2, %v4752_v14 }
 0xce5   : > { %v4431_v54 = vpop.f32.mrb[22].mxu0 }
 0xce6   : > { %v3237_v55 = vadd.f32 %v4431_v54, %v3224_v52  ;;  %v3193_v56 = vpop.f32.mrb[23].mxu0 }
 0xce7   : > { %v3236_v57 = vadd.f32 %v3219_v53, %v3193_v56 }
 0xce8   : > { %v3241_v59 = vmax.f32 %v3237_v55, 0.0 }
 0xce9   : > { %v3240_v61 = vmax.f32 %v3236_v57, 0.0  ;;  %v4434_v62 = vpop.f32.mrb[24].mxu0 }
 0xcea   : > { %v3239_v0 = vadd.f32 %v4434_v62, %v3234_v60  ;;  %v3203_v1 = vpop.f32.mrb[25].mxu0 }
 0xceb   : > { %v4571_v2 = vpack.c.bf16 %v3241_v59, %v3240_v61  ;;  %v3238_v3 = vadd.f32 %v3229_v63, %v3203_v1 }
 0xcec   : > { %v3243_v4 = vmax.f32 %v3239_v0, 0.0 }
 0xced   : > { %v3242_v5 = vmax.f32 %v3238_v3, 0.0  ;;  %4572 = vmatpush3.bf16.msra.mxu0 %v4571_v2 }
 0xcee   : > { %4573 = vmatprep.subr.bf16.mxu0 %v4750_v13 }
 0xcef   : > { %v4574_v6 = vpack.c.bf16 %v3243_v4, %v3242_v5 }
 0xcf1   : > { %4575 = vmatpush3.bf16.msra.mxu0 %v4574_v6 }
 0xcf2   : > { %4576 = vmatprep.subr.bf16.mxu0 %v4750_v13 }
 0xcf4   : > { %4444 = vmatmul.mubr.msk.f32.vlgmr.msra.gmra.mrb[26].mxu0 %vm799_vm0, %v3244_v7 }
 0xcf5   : > { %4578 = vmatpush3.bf16.msra.mxu0 %v4571_v2  ;;  %4454 = vmatprep.mubr.msk.f32.mxu0 %vm4751_vm2, %v4752_v14 }
 0xcf6   : > { %4579 = vmatprep.subr.bf16.mxu0 %v4750_v13 }
 0xcf9   : > { %4581 = vmatpush3.bf16.msra.mxu0 %v4574_v6 }
 0xcfa   : > { %4582 = vmatprep.subr.bf16.mxu0 %v4750_v13 }
 0xcfc   : > { %4455 = vmatmul.mubr.msk.f32.vlgmr.msra.gmra.mrb[28].mxu0 %vm799_vm0, %v4032_v8 }
 0xcfd   : > { %4584 = vmatpush3.bf16.msra.mxu0 %v5079_v50  ;;  %4461 = vmatprep.mubr.msk.f32.mxu0 %vm4751_vm2, %v4752_v14  ;;  %v4031_v50 = vld [vmem:[%s5456_s11 + $0x2] sm:$0x1] }
 0xcfe   : > { %4585 = vmatprep.subr.bf16.mxu0 %v4750_v13 }
 0xdc7   : > { %v3314_v9 = vpop.f32.mrb[26].mxu0 }
 0xdc8   : > { %4480 = vmatmul.mubr.msk.f32.vlgmr.msra.gmra.mrb[40].mxu1 %vm1355_vm1, %v3314_v9  ;;  %v4445_v10 = vpop.f32.mrb[27].mxu0 }
 0xdc9   : > { %4596 = vmatpush3.bf16.msra.mxu1 %v4571_v2  ;;  %4490 = vmatprep.mubr.msk.f32.mxu1 %vm4751_vm2, %v4752_v14 }
 0xdca   : > { %4597 = vmatprep.subr.bf16.mxu1 %v4750_v13 }
 0xdcd   : > { %4599 = vmatpush3.bf16.msra.mxu1 %v4574_v6 }
 0xdcf   : > { %v3393_v11 = vpop.f32.mrb[28].mxu0 }
 0xdd0   : > { %4462 = vmatmul.mubr.msk.f32.vlgmr.msra.gmra.mrb[30].mxu0 %vm1355_vm1, %v3393_v11  ;;  %4491 = vmatmul.mubr.msk.f32.vlgmr.msra.gmra.mrb[40].mxu1 %vm799_vm0, %v4031_v50  ;;  %v4456_v12 = vpop.f32.mrb[29].mxu0 }
 0xdd1   : > { %4587 = vmatpush3.bf16.msra.mxu0 %v4571_v2  ;;  %4472 = vmatprep.mubr.msk.f32.mxu0 %vm4751_vm2, %v4752_v14 }
 0xdd2   : > { %4588 = vmatprep.subr.bf16.mxu0 %v4750_v13 }
 0xdd5   : > { %4590 = vmatpush3.bf16.msra.mxu0 %v4574_v6 }
 0xdd6   : > { %4600 = vmatprep.subr.bf16.mxu0 %v4750_v13 }
 0xdd8   : > { %4473 = vmatmul.mubr.msk.f32.vlgmr.msra.gmra.mrb[30].mxu0 %vm799_vm0, %v4030_v17 }
 0xdd9   : > { %4602 = vmatpush3.bf16.msra.mxu0 %v4601_v18  ;;  %4497 = vmatprep.mubr.msk.f32.mxu0 %vm4751_vm2, %v4752_v14 }
 0xdda   : > { %4603 = vmatprep.subr.bf16.mxu0 %v4750_v13 }
 0xea3   : > { %v3685_v22 = vpop.f32.mrb[40].mxu1 }
 0xea4   : > { %v4492_v23 = vpop.f32.mrb[41].mxu1  ;;  %4498 = vmatmul.mubr.msk.f32.vlgmr.msra.gmra.mrb[32].mxu0 %vm1355_vm1, %v3685_v22 }
 0xea5   : > { %4605 = vmatpush3.bf16.msra.mxu0 %v4604_v21  ;;  %4504 = vmatprep.mubr.msk.f32.mxu0 %vm4751_vm2, %v4752_v14 }
 0xeab   : > { %v3539_v13 = vpop.f32.mrb[30].mxu0 }
 0xeac   : > { %v4474_v24 = vpop.f32.mrb[31].mxu0  ;;  %4505 = vmatmul.mubr.msk.f32.vlgmr.msra.gmra.mrb[34].mxu0 %vm1355_vm1, %v3539_v13 }
 0xf77   : > { %v3763_v27 = vpop.f32.mrb[32].mxu0 }
 0xf78   : > { %v4499_v29 = vpop.f32.mrb[33].mxu0 }
 0xf7f   : > { %v3836_v32 = vpop.f32.mrb[34].mxu0 }
 0xf80   : > { %v3837_v34 = vadd.f32 %v3836_v32, %v3763_v27  ;;  %v4506_v35 = vpop.f32.mrb[35].mxu0 }
 0xf82   : > { %v3850_v14 = vadd.f32 %v3849_v33, %v3837_v34 }
 0xf84   : > { %3852 = vst.msk [vmem:[%s700_s5] sm:$0x1] %vm3851_vm6, %v3850_v14 }
 0xf85   : > { %4698 = shalt.err (!%p4695_p3)
}
 0xf86   : > { %s4699_s27 = scalar_lea.hbm %s5403_s2, 16  ;;  %s4703_s6 = scalar_lea.hbm %s5468_s23, 32 }
 0xf87   : > { %p4700_p4 = scmp.ne.s32.totalorder %s5403_s2, %s4699_s27  ;;  %p4704_p9 = scmp.lt.u32.totalorder %s5403_s2, %s5468_s23 }
 0xf88   : > { %p4705_p10 = scmp.lt.u32.totalorder %s4703_s6, %s4699_s27  ;;  %p4707_p12 = scmp.lt.u32.totalorder %s4699_s27, %s5403_s2 }
 0xf89   : > { %p4701_p7 = pnand %p4700_p4, %p4915_p5 }
 0xf8a   : > { %p4706_p11 = por %p4705_p10, %p4704_p9 }
 0xf8b   : > { %p4702_p8 = pneg %p4701_p7 }
 0xf8c   : > { %p4708_p13 = por %p4707_p12, %p4706_p11 }
 0xf8e   : > { %p4709_p0 = pnand %p4708_p13, %p4702_p8 }
 0xf90   : > { %4712 = shalt.err (!%p4709_p0)
}
 0xf91   : > { %4640 = dma.vmem_to_hbm [thread:$0]  (%p4915_p5), %s5405_s3, 16, %s5403_s2, %s3854_s24  }
 0xf92 PF: > { %s5510_s8 = sld [smem:[#allocation8_spill]]  ;;  %s5511_s0 = sld [smem:[#allocation6_spill]] }
 0xf98   : > { %p4646_p1 = scmp.ge.s32.totalorder %s5510_s8, 2  ;;  %s3878_s1 = sand.u32 1, %s5511_s0  }
 0xf99   : > { %s3879_s5 = scalar_lea.sflag [#allocation4], %s3878_s1 }
 0xf9a   : > { %p4643_p2 = pnand %p4646_p1, %p4919_p6 }
 0xf9c   : > { %4730 = dma.done.wait (!%p4643_p2), %s3879_s5, 16  }
 0xf9d   : > { %4732 = vsyncadd (!%p4643_p2), %s3879_s5, 4294967280  ;;  %s5513_s1 = sld [smem:[#allocation9_spill]]  ;;  %s5514_s27 = sld [smem:[#allocation7_spill]] }
 0xf9e   : > { %s5515_s5 = sld [smem:[#allocation10_spill]]  ;;  %s5516_s24 = smov %s4739_s25 }
 0xfa3   : > { %p35_p3 = scmp.ge.s32.totalorder %s5513_s1, 4   ;;  %s5517_s25 = smov %s5514_s27 }
 0xfa5   :  { %37 = sbr.rel (!%p35_p3) target bundleno = 13 (0xd), region = 160 }
 0xfac   :  { %3883 = vsyncpa [#allocation4], 1 }
 0xfad   :  { %3885 = vsyncpa [#allocation4 + $0x1], 1 }

</bundles_post_ra>
